<compile_context>
chip_gen: v7x
topology: tpu7x:2x2x1
jax: 0.10.0
libtpu: 0.0.40
codegen_flags: <defaults>
</compile_context>

<pallas_src>
import functools

import jax
import jax.numpy as jnp
from jax import lax
from jax.experimental import pallas as pl
from jax.experimental.pallas import tpu as pltpu

_SUBLANE = 8          # f32 sublane multiple -> batch padding
_LANE = 128           # lane width -> head output padding
_NEG_PAD = -1e30      # padded head-bias value (softmax-neutral)
_STATIC_T_MAX = 32    # fully unroll the time loop up to this length


def _round_up(x, m):
    return (x + m - 1) // m * m


# ----------------------------- kernel ---------------------------------------


def _fused_lstm_kernel(*refs, time_steps, batch, apply_softmax):
    """All LSTM layers + linear head in a single program.

    refs layout (inputs, outputs, scratch):
      refs[0]               x        (T*Bp, D_in) f32, time-major rows t*Bp + b
      refs[1 : 1+3*L]       per layer: wih (D_l,4H), whh (H,4H), b (1,4H) f32
      refs[-5], refs[-4]    head_w (H, O_pad), head_b (1, O_pad)
      refs[-3]              out (Bp, O_pad) f32
      refs[-2]              xp scratch  (T*Bp, 4H) f32   (hoisted projection)
      refs[-1]              seq scratch (T*Bp, H)  mxu dtype (inter-layer seq)
    Gate column order is (i, f, o, g) (pre-reordered by prepare_params).
    """
    T, Bp = time_steps, batch
    x_ref = refs[0]
    head_w_ref, head_b_ref = refs[-5], refs[-4]
    out_ref = refs[-3]
    xp_ref, seq_ref = refs[-2], refs[-1]
    layer_refs = refs[1:-5]
    num_layers = len(layer_refs) // 3

    H = layer_refs[1].shape[0]          # whh: (H, 4H)
    G = 4 * H

    # Hoisted gate-activation constants (built ONCE, reused every step):
    #   i|f|o columns: sigmoid(x) = 0.5 * tanh(0.5 * x) + 0.5
    #   g     columns: tanh(x)
    # -> a single EUP tanh pass over the whole (Bp, 4H) vreg per step.
    col = lax.broadcasted_iota(jnp.int32, (Bp, G), 1)
    is_g = col >= 3 * H
    scale = jnp.where(is_g, 1.0, 0.5).astype(jnp.float32)   # pre- and post-scale
    shift = jnp.where(is_g, 0.0, 0.5).astype(jnp.float32)

    h = None
    for l in range(num_layers):
        wih = layer_refs[3 * l][...]       # (D_l, 4H)  mxu dtype
        whh = layer_refs[3 * l + 1][...]   # (H, 4H)    mxu dtype
        b = layer_refs[3 * l + 2][...]     # (1, 4H)    f32, b_ih + b_hh
        is_last = l + 1 == num_layers

        # Hoisted input projection + bias: ONE big MXU matmul per layer, parked
        # in VMEM scratch so the recurrence never holds it live in vregs.
        seq_in = x_ref[...].astype(wih.dtype) if l == 0 else seq_ref[...]
        xp_ref[...] = (
            jnp.dot(seq_in, wih, preferred_element_type=jnp.float32) + b
        )

        h = jnp.zeros((Bp, H), jnp.float32)
        c = jnp.zeros((Bp, H), jnp.float32)

        def step(row, h, c):
            # Serial critical path: only h @ W_hh + gate math per step.
            gates = xp_ref[pl.ds(row, Bp), :] + jnp.dot(
                h.astype(whh.dtype), whh, preferred_element_type=jnp.float32
            )                                                    # (Bp, 4H) f32
            act = jnp.tanh(gates * scale) * scale + shift        # one EUP pass
            i_g = act[:, :H]
            f_g = act[:, H : 2 * H]
            o_g = act[:, 2 * H : 3 * H]
            g_g = act[:, 3 * H :]
            c = f_g * c + i_g * g_g
            h = o_g * jnp.tanh(c)
            if not is_last:
                # Next layer's input sequence never leaves VMEM; stored in the
                # matmul dtype so no recast before the next projection.
                seq_ref[pl.ds(row, Bp), :] = h.astype(seq_ref.dtype)
            return h, c

        if T <= _STATIC_T_MAX:
            # Fully unrolled: LLO overlaps step t+1's MXU push with step t's
            # gate math.
            for t in range(T):
                h, c = step(t * Bp, h, c)
        else:
            # Long sequences: bound live ranges / code size.
            def body(t, carry):
                return step(pl.multiple_of(t * Bp, Bp), *carry)

            h, c = lax.fori_loop(0, T, body, (h, c), unroll=2)

    # Fused linear head on the last timestep of the last layer.  O is padded to
    # a full 128-lane block (unmasked store); padded bias columns are -1e30 so
    # the fused softmax gives them zero probability.
    logits = (
        jnp.dot(
            h.astype(head_w_ref.dtype),
            head_w_ref[...],
            preferred_element_type=jnp.float32,
        )
        + head_b_ref[...]
    )
    if apply_softmax:
        logits = jax.nn.softmax(logits, axis=-1)
    out_ref[...] = logits


# ----------------------------- wrappers --------------------------------------


_VMEM = pl.BlockSpec(memory_space=pltpu.MemorySpace.VMEM)


def lstm_forward(x_bct, prep, inference=False):
    """Equivalent of LSTM.forward: x (B, input_dim, T) -> (B, output_dim)."""
    B, _, T = x_bct.shape
    H = prep["hidden_dim"]
    O = prep["output_dim"]
    O_pad = prep["head_w"].shape[1]
    Bp = _round_up(B, _SUBLANE)

    # PyTorch does x.permute(0,2,1) -> (B, T, C); the kernel wants time-major
    # (T, Bp, C) with the batch padded to a whole sublane group, flattened to 2D.
    # x stays f32 into the kernel; it is cast to the MXU dtype only at the matmul.
    x_tbd = jnp.transpose(x_bct, (2, 0, 1)).astype(jnp.float32)
    if Bp != B:
        x_tbd = jnp.pad(x_tbd, ((0, 0), (0, Bp - B), (0, 0)))
    x_flat = x_tbd.reshape(T * Bp, x_tbd.shape[-1])

    args = [x_flat]
    for lyr in prep["layers"]:
        args += [lyr["wih"], lyr["whh"], lyr["b"]]
    args += [prep["head_w"], prep["head_b"]]

    out = pl.pallas_call(
        functools.partial(
            _fused_lstm_kernel, time_steps=T, batch=Bp, apply_softmax=inference
        ),
        out_shape=jax.ShapeDtypeStruct((Bp, O_pad), jnp.float32),
        in_specs=[_VMEM] * len(args),
        out_specs=_VMEM,
        scratch_shapes=[
            pltpu.VMEM((T * Bp, 4 * H), jnp.float32),    # hoisted input projection
            pltpu.VMEM((T * Bp, H), prep["mxu_dtype"]),  # inter-layer hidden seq
        ],
        # Scoped VMEM default is 16/32 MiB (v5e / v6e+v7x); raise so larger
        # T*B / H still fit the all-resident design.
        compiler_params=pltpu.CompilerParams(vmem_limit_bytes=64 * 1024 * 1024),
    )(*args)

    # Strip batch + head padding.
    return out[:B, :O]


def init_params(key, input_dim, hidden_dim, output_dim, num_layers):
    """PyTorch-layout parameters, uniform(-k, k) with k = 1/sqrt(H)."""
    k = 1.0 / jnp.sqrt(hidden_dim)
    params = {"layers": []}
    for l in range(num_layers):
        d_in = input_dim if l == 0 else hidden_dim
        key, k1, k2, k3, k4 = jax.random.split(key, 5)
        params["layers"].append(
            {
                "w_ih": jax.random.uniform(k1, (4 * hidden_dim, d_in), jnp.float32, -k, k),
                "w_hh": jax.random.uniform(k2, (4 * hidden_dim, hidden_dim), jnp.float32, -k, k),
                "b_ih": jax.random.uniform(k3, (4 * hidden_dim,), jnp.float32, -k, k),
                "b_hh": jax.random.uniform(k4, (4 * hidden_dim,), jnp.float32, -k, k),
            }
        )
    key, k5, k6 = jax.random.split(key, 3)
    params["linear_w"] = jax.random.uniform(k5, (output_dim, hidden_dim), jnp.float32, -k, k)
    params["linear_b"] = jax.random.uniform(k6, (output_dim,), jnp.float32, -k, k)
    return params


def _reorder_ifog(a):
    """Reorder last dim from PyTorch gate order (i,f,g,o) to (i,f,o,g)."""
    H = a.shape[-1] // 4
    return jnp.concatenate([a[..., : 2 * H], a[..., 3 * H :], a[..., 2 * H : 3 * H]], axis=-1)


def prepare_params(params, mxu_dtype=jnp.bfloat16):
    """One-time weight prep: transpose, gate reorder, bias sum, head padding."""
    layers = []
    H = params["layers"][0]["w_hh"].shape[1]
    for lyr in params["layers"]:
        wih_t = _reorder_ifog(jnp.transpose(lyr["w_ih"]))            # (D_in, 4H)
        whh_t = _reorder_ifog(jnp.transpose(lyr["w_hh"]))            # (H, 4H)
        b = _reorder_ifog((lyr["b_ih"] + lyr["b_hh"])[None, :])      # (1, 4H)
        layers.append(
            {
                "wih": wih_t.astype(mxu_dtype),
                "whh": whh_t.astype(mxu_dtype),
                "b": b.astype(jnp.float32),
            }
        )
    O = params["linear_w"].shape[0]
    O_pad = _round_up(O, _LANE)
    head_w = jnp.transpose(params["linear_w"])                        # (H, O)
    head_w = jnp.pad(head_w, ((0, 0), (0, O_pad - O)))                # zeros
    head_b = jnp.pad(params["linear_b"], (0, O_pad - O), constant_values=_NEG_PAD)
    return {
        "layers": layers,
        "head_w": head_w.astype(mxu_dtype),                           # (H, O_pad)
        "head_b": head_b[None, :].astype(jnp.float32),                # (1, O_pad)
        "hidden_dim": int(H),
        "output_dim": int(O),
        "mxu_dtype": mxu_dtype,
    }


# ----------------------------- reference (pure JAX, f32) ---------------------


def _reference_forward(x_bct, params, inference=False):
    x = jnp.transpose(x_bct, (0, 2, 1)).astype(jnp.float32)  # (B, T, C)
    B, T, _ = x.shape
    seq = x
    h = None
    for lyr in params["layers"]:
        H = lyr["w_hh"].shape[1]
        wih, whh = lyr["w_ih"], lyr["w_hh"]
        b = lyr["b_ih"] + lyr["b_hh"]
        h = jnp.zeros((B, H), jnp.float32)
        c = jnp.zeros((B, H), jnp.float32)
        outs = []
        for t in range(T):
            g = seq[:, t] @ wih.T + h @ whh.T + b
            i = jax.nn.sigmoid(g[:, :H])
            f = jax.nn.sigmoid(g[:, H : 2 * H])
            gg = jnp.tanh(g[:, 2 * H : 3 * H])
            o = jax.nn.sigmoid(g[:, 3 * H :])
            c = f * c + i * gg
            h = o * jnp.tanh(c)
            outs.append(h)
        seq = jnp.stack(outs, axis=1)
    logits = h @ params["linear_w"].T + params["linear_b"]
    return jax.nn.softmax(logits, -1) if inference else logits


# ----------------------------- main ------------------------------------------

if __name__ == "__main__":
    key = jax.random.PRNGKey(0)

    B, input_dim, T = 2, 16, 8
    hidden_dim, output_dim, num_layers = 32, 10, 2

    key, kx, kp = jax.random.split(key, 3)
    x = jax.random.normal(kx, (B, input_dim, T), dtype=jnp.float32)
    params = init_params(kp, input_dim, hidden_dim, output_dim, num_layers)

    # Correctness: f32 MXU operands vs pure-JAX reference (tight tolerance).
    prep_f32 = prepare_params(params, mxu_dtype=jnp.float32)
    out_f32 = lstm_forward(x, prep_f32, inference=False)
    jax.block_until_ready(out_f32)
    ref = _reference_forward(x, params, inference=False)
    assert out_f32.shape == (B, output_dim), out_f32.shape
    assert jnp.allclose(out_f32, ref, atol=1e-3, rtol=1e-3), (out_f32, ref)

    # Performance path: bf16 MXU operands (v6e/v7x native), f32 elementwise.
    prep = prepare_params(params, mxu_dtype=jnp.bfloat16)
    logits = lstm_forward(x, prep, inference=False)
    jax.block_until_ready(logits)
    assert logits.shape == (B, output_dim), logits.shape
    assert jnp.all(jnp.isfinite(logits))
    assert jnp.allclose(logits, ref, atol=5e-2, rtol=5e-2)

    # Inference path (fused softmax head).
    probs = lstm_forward(x, prep, inference=True)
    jax.block_until_ready(probs)
    assert probs.shape == (B, output_dim)
    assert jnp.allclose(jnp.sum(probs, axis=-1), 1.0, atol=1e-3)

    print("KERNEL_OK")
</pallas_src>

<mosaic_0001>
module attributes {stable_mosaic.version = 11 : i64} {
  func.func @_fused_lstm_kernel(%arg0: memref<64x16xf32, #tpu.memory_space<vmem>>, %arg1: memref<16x128xf32, #tpu.memory_space<vmem>>, %arg2: memref<32x128xf32, #tpu.memory_space<vmem>>, %arg3: memref<1x128xf32, #tpu.memory_space<vmem>>, %arg4: memref<32x128xf32, #tpu.memory_space<vmem>>, %arg5: memref<32x128xf32, #tpu.memory_space<vmem>>, %arg6: memref<1x128xf32, #tpu.memory_space<vmem>>, %arg7: memref<32x128xf32, #tpu.memory_space<vmem>>, %arg8: memref<1x128xf32, #tpu.memory_space<vmem>>, %arg9: memref<8x128xf32, #tpu.memory_space<vmem>>, %arg10: memref<64x128xf32, #tpu.memory_space<vmem>>, %arg11: memref<64x32xf32, #tpu.memory_space<vmem>>) attributes {dimension_semantics = [], scalar_prefetch = 0 : i64, scratch_operands = 2 : i64, tpu.core_type = #tpu.core_type<tc>} {
    %0 = tpu.iota {dimensions = array<i32: 1>} : vector<8x128xi32>
    %c96_i32 = arith.constant 96 : i32
    %1 = vector.broadcast %c96_i32 : i32 to vector<8x128xi32>
    %2 = arith.cmpi sge, %0, %1 : vector<8x128xi32>
    %cst = arith.constant 1.000000e+00 : f32
    %cst_0 = arith.constant 5.000000e-01 : f32
    %3 = vector.broadcast %cst : f32 to vector<8x128xf32>
    %4 = vector.broadcast %cst_0 : f32 to vector<8x128xf32>
    %5 = arith.select %2, %3, %4 : vector<8x128xi1>, vector<8x128xf32>
    %cst_1 = arith.constant 0.000000e+00 : f32
    %cst_2 = arith.constant 5.000000e-01 : f32
    %6 = vector.broadcast %cst_1 : f32 to vector<8x128xf32>
    %7 = vector.broadcast %cst_2 : f32 to vector<8x128xf32>
    %8 = arith.select %2, %6, %7 : vector<8x128xi1>, vector<8x128xf32>
    %c0 = arith.constant 0 : index
    %c0_3 = arith.constant 0 : index
    %9 = vector.load %arg1[%c0, %c0_3] : memref<16x128xf32, #tpu.memory_space<vmem>>, vector<16x128xf32>
    %c0_4 = arith.constant 0 : index
    %c0_5 = arith.constant 0 : index
    %10 = vector.load %arg2[%c0_4, %c0_5] : memref<32x128xf32, #tpu.memory_space<vmem>>, vector<32x128xf32>
    %c0_6 = arith.constant 0 : index
    %c0_7 = arith.constant 0 : index
    %11 = vector.load %arg3[%c0_6, %c0_7] : memref<1x128xf32, #tpu.memory_space<vmem>>, vector<1x128xf32>
    %c0_8 = arith.constant 0 : index
    %c0_9 = arith.constant 0 : index
    %12 = vector.load %arg0[%c0_8, %c0_9] : memref<64x16xf32, #tpu.memory_space<vmem>>, vector<64x16xf32>
    %cst_10 = arith.constant dense<0.000000e+00> : vector<64x128xf32>
    %13 = tpu.matmul %12, %9, %cst_10 {dimension_numbers = #tpu.dot_dimension_numbers<[1], [0], [0], [1], [0, 0, 1, 1], [], []>} : vector<64x16xf32>, vector<16x128xf32>, vector<64x128xf32> -> vector<64x128xf32>
    %14 = vector.broadcast %11 : vector<1x128xf32> to vector<64x128xf32>
    %15 = arith.addf %13, %14 : vector<64x128xf32>
    %c0_11 = arith.constant 0 : index
    %c0_12 = arith.constant 0 : index
    %16 = vector.load %arg10[%c0_11, %c0_12] : memref<64x128xf32, #tpu.memory_space<vmem>>, vector<64x128xf32>
    tpu.vector_store %arg10[%c0_11, %c0_12], %15 {strides = array<i32>} : memref<64x128xf32, #tpu.memory_space<vmem>>, vector<64x128xf32>,
    %cst_13 = arith.constant 0.000000e+00 : f32
    %17 = vector.broadcast %cst_13 : f32 to vector<8x32xf32>
    %cst_14 = arith.constant 0.000000e+00 : f32
    %18 = vector.broadcast %cst_14 : f32 to vector<8x32xf32>
    %c0_15 = arith.constant 0 : index
    %c0_16 = arith.constant 0 : index
    %19 = vector.load %arg10[%c0_15, %c0_16] : memref<64x128xf32, #tpu.memory_space<vmem>>, vector<8x128xf32>
    %cst_17 = arith.constant dense<0.000000e+00> : vector<8x128xf32>
    %20 = tpu.matmul %17, %10, %cst_17 {dimension_numbers = #tpu.dot_dimension_numbers<[1], [0], [0], [1], [0, 0, 1, 1], [], []>} : vector<8x32xf32>, vector<32x128xf32>, vector<8x128xf32> -> vector<8x128xf32>
    %21 = arith.addf %19, %20 : vector<8x128xf32>
    %22 = arith.mulf %21, %5 : vector<8x128xf32>
    %23 = math.tanh %22 : vector<8x128xf32>
    %24 = arith.mulf %23, %5 : vector<8x128xf32>
    %25 = arith.addf %24, %8 : vector<8x128xf32>
    %26 = vector.extract_strided_slice %25 {offsets = [0, 0], sizes = [8, 32], strides = [1, 1]} : vector<8x128xf32> to vector<8x32xf32>
    %27 = vector.extract_strided_slice %25 {offsets = [0, 32], sizes = [8, 32], strides = [1, 1]} : vector<8x128xf32> to vector<8x32xf32>
    %28 = vector.extract_strided_slice %25 {offsets = [0, 64], sizes = [8, 32], strides = [1, 1]} : vector<8x128xf32> to vector<8x32xf32>
    %29 = vector.extract_strided_slice %25 {offsets = [0, 96], sizes = [8, 32], strides = [1, 1]} : vector<8x128xf32> to vector<8x32xf32>
    %30 = arith.mulf %27, %18 : vector<8x32xf32>
    %31 = arith.mulf %26, %29 : vector<8x32xf32>
    %32 = arith.addf %30, %31 : vector<8x32xf32>
    %33 = math.tanh %32 : vector<8x32xf32>
    %34 = arith.mulf %28, %33 : vector<8x32xf32>
    %c0_18 = arith.constant 0 : index
    %c0_19 = arith.constant 0 : index
    %35 = vector.load %arg11[%c0_18, %c0_19] : memref<64x32xf32, #tpu.memory_space<vmem>>, vector<8x32xf32>
    tpu.vector_store %arg11[%c0_18, %c0_19], %34 {strides = array<i32>} : memref<64x32xf32, #tpu.memory_space<vmem>>, vector<8x32xf32>,
    %c8 = arith.constant 8 : index
    %c0_20 = arith.constant 0 : index
    %36 = vector.load %arg10[%c8, %c0_20] : memref<64x128xf32, #tpu.memory_space<vmem>>, vector<8x128xf32>
    %cst_21 = arith.constant dense<0.000000e+00> : vector<8x128xf32>
    %37 = tpu.matmul %34, %10, %cst_21 {dimension_numbers = #tpu.dot_dimension_numbers<[1], [0], [0], [1], [0, 0, 1, 1], [], []>} : vector<8x32xf32>, vector<32x128xf32>, vector<8x128xf32> -> vector<8x128xf32>
    %38 = arith.addf %36, %37 : vector<8x128xf32>
    %39 = arith.mulf %38, %5 : vector<8x128xf32>
    %40 = math.tanh %39 : vector<8x128xf32>
    %41 = arith.mulf %40, %5 : vector<8x128xf32>
    %42 = arith.addf %41, %8 : vector<8x128xf32>
    %43 = vector.extract_strided_slice %42 {offsets = [0, 0], sizes = [8, 32], strides = [1, 1]} : vector<8x128xf32> to vector<8x32xf32>
    %44 = vector.extract_strided_slice %42 {offsets = [0, 32], sizes = [8, 32], strides = [1, 1]} : vector<8x128xf32> to vector<8x32xf32>
    %45 = vector.extract_strided_slice %42 {offsets = [0, 64], sizes = [8, 32], strides = [1, 1]} : vector<8x128xf32> to vector<8x32xf32>
    %46 = vector.extract_strided_slice %42 {offsets = [0, 96], sizes = [8, 32], strides = [1, 1]} : vector<8x128xf32> to vector<8x32xf32>
    %47 = arith.mulf %44, %32 : vector<8x32xf32>
    %48 = arith.mulf %43, %46 : vector<8x32xf32>
    %49 = arith.addf %47, %48 : vector<8x32xf32>
    %50 = math.tanh %49 : vector<8x32xf32>
    %51 = arith.mulf %45, %50 : vector<8x32xf32>
    %c8_22 = arith.constant 8 : index
    %c0_23 = arith.constant 0 : index
    %52 = vector.load %arg11[%c8_22, %c0_23] : memref<64x32xf32, #tpu.memory_space<vmem>>, vector<8x32xf32>
    tpu.vector_store %arg11[%c8_22, %c0_23], %51 {strides = array<i32>} : memref<64x32xf32, #tpu.memory_space<vmem>>, vector<8x32xf32>,
    %c16 = arith.constant 16 : index
    %c0_24 = arith.constant 0 : index
    %53 = vector.load %arg10[%c16, %c0_24] : memref<64x128xf32, #tpu.memory_space<vmem>>, vector<8x128xf32>
    %cst_25 = arith.constant dense<0.000000e+00> : vector<8x128xf32>
    %54 = tpu.matmul %51, %10, %cst_25 {dimension_numbers = #tpu.dot_dimension_numbers<[1], [0], [0], [1], [0, 0, 1, 1], [], []>} : vector<8x32xf32>, vector<32x128xf32>, vector<8x128xf32> -> vector<8x128xf32>
    %55 = arith.addf %53, %54 : vector<8x128xf32>
    %56 = arith.mulf %55, %5 : vector<8x128xf32>
    %57 = math.tanh %56 : vector<8x128xf32>
    %58 = arith.mulf %57, %5 : vector<8x128xf32>
    %59 = arith.addf %58, %8 : vector<8x128xf32>
    %60 = vector.extract_strided_slice %59 {offsets = [0, 0], sizes = [8, 32], strides = [1, 1]} : vector<8x128xf32> to vector<8x32xf32>
    %61 = vector.extract_strided_slice %59 {offsets = [0, 32], sizes = [8, 32], strides = [1, 1]} : vector<8x128xf32> to vector<8x32xf32>
    %62 = vector.extract_strided_slice %59 {offsets = [0, 64], sizes = [8, 32], strides = [1, 1]} : vector<8x128xf32> to vector<8x32xf32>
    %63 = vector.extract_strided_slice %59 {offsets = [0, 96], sizes = [8, 32], strides = [1, 1]} : vector<8x128xf32> to vector<8x32xf32>
    %64 = arith.mulf %61, %49 : vector<8x32xf32>
    %65 = arith.mulf %60, %63 : vector<8x32xf32>
    %66 = arith.addf %64, %65 : vector<8x32xf32>
    %67 = math.tanh %66 : vector<8x32xf32>
    %68 = arith.mulf %62, %67 : vector<8x32xf32>
    %c16_26 = arith.constant 16 : index
    %c0_27 = arith.constant 0 : index
    %69 = vector.load %arg11[%c16_26, %c0_27] : memref<64x32xf32, #tpu.memory_space<vmem>>, vector<8x32xf32>
    tpu.vector_store %arg11[%c16_26, %c0_27], %68 {strides = array<i32>} : memref<64x32xf32, #tpu.memory_space<vmem>>, vector<8x32xf32>,
    %c24 = arith.constant 24 : index
    %c0_28 = arith.constant 0 : index
    %70 = vector.load %arg10[%c24, %c0_28] : memref<64x128xf32, #tpu.memory_space<vmem>>, vector<8x128xf32>
    %cst_29 = arith.constant dense<0.000000e+00> : vector<8x128xf32>
    %71 = tpu.matmul %68, %10, %cst_29 {dimension_numbers = #tpu.dot_dimension_numbers<[1], [0], [0], [1], [0, 0, 1, 1], [], []>} : vector<8x32xf32>, vector<32x128xf32>, vector<8x128xf32> -> vector<8x128xf32>
    %72 = arith.addf %70, %71 : vector<8x128xf32>
    %73 = arith.mulf %72, %5 : vector<8x128xf32>
    %74 = math.tanh %73 : vector<8x128xf32>
    %75 = arith.mulf %74, %5 : vector<8x128xf32>
    %76 = arith.addf %75, %8 : vector<8x128xf32>
    %77 = vector.extract_strided_slice %76 {offsets = [0, 0], sizes = [8, 32], strides = [1, 1]} : vector<8x128xf32> to vector<8x32xf32>
    %78 = vector.extract_strided_slice %76 {offsets = [0, 32], sizes = [8, 32], strides = [1, 1]} : vector<8x128xf32> to vector<8x32xf32>
    %79 = vector.extract_strided_slice %76 {offsets = [0, 64], sizes = [8, 32], strides = [1, 1]} : vector<8x128xf32> to vector<8x32xf32>
    %80 = vector.extract_strided_slice %76 {offsets = [0, 96], sizes = [8, 32], strides = [1, 1]} : vector<8x128xf32> to vector<8x32xf32>
    %81 = arith.mulf %78, %66 : vector<8x32xf32>
    %82 = arith.mulf %77, %80 : vector<8x32xf32>
    %83 = arith.addf %81, %82 : vector<8x32xf32>
    %84 = math.tanh %83 : vector<8x32xf32>
    %85 = arith.mulf %79, %84 : vector<8x32xf32>
    %c24_30 = arith.constant 24 : index
    %c0_31 = arith.constant 0 : index
    %86 = vector.load %arg11[%c24_30, %c0_31] : memref<64x32xf32, #tpu.memory_space<vmem>>, vector<8x32xf32>
    tpu.vector_store %arg11[%c24_30, %c0_31], %85 {strides = array<i32>} : memref<64x32xf32, #tpu.memory_space<vmem>>, vector<8x32xf32>,
    %c32 = arith.constant 32 : index
    %c0_32 = arith.constant 0 : index
    %87 = vector.load %arg10[%c32, %c0_32] : memref<64x128xf32, #tpu.memory_space<vmem>>, vector<8x128xf32>
    %cst_33 = arith.constant dense<0.000000e+00> : vector<8x128xf32>
    %88 = tpu.matmul %85, %10, %cst_33 {dimension_numbers = #tpu.dot_dimension_numbers<[1], [0], [0], [1], [0, 0, 1, 1], [], []>} : vector<8x32xf32>, vector<32x128xf32>, vector<8x128xf32> -> vector<8x128xf32>
    %89 = arith.addf %87, %88 : vector<8x128xf32>
    %90 = arith.mulf %89, %5 : vector<8x128xf32>
    %91 = math.tanh %90 : vector<8x128xf32>
    %92 = arith.mulf %91, %5 : vector<8x128xf32>
    %93 = arith.addf %92, %8 : vector<8x128xf32>
    %94 = vector.extract_strided_slice %93 {offsets = [0, 0], sizes = [8, 32], strides = [1, 1]} : vector<8x128xf32> to vector<8x32xf32>
    %95 = vector.extract_strided_slice %93 {offsets = [0, 32], sizes = [8, 32], strides = [1, 1]} : vector<8x128xf32> to vector<8x32xf32>
    %96 = vector.extract_strided_slice %93 {offsets = [0, 64], sizes = [8, 32], strides = [1, 1]} : vector<8x128xf32> to vector<8x32xf32>
    %97 = vector.extract_strided_slice %93 {offsets = [0, 96], sizes = [8, 32], strides = [1, 1]} : vector<8x128xf32> to vector<8x32xf32>
    %98 = arith.mulf %95, %83 : vector<8x32xf32>
    %99 = arith.mulf %94, %97 : vector<8x32xf32>
    %100 = arith.addf %98, %99 : vector<8x32xf32>
    %101 = math.tanh %100 : vector<8x32xf32>
    %102 = arith.mulf %96, %101 : vector<8x32xf32>
    %c32_34 = arith.constant 32 : index
    %c0_35 = arith.constant 0 : index
    %103 = vector.load %arg11[%c32_34, %c0_35] : memref<64x32xf32, #tpu.memory_space<vmem>>, vector<8x32xf32>
    tpu.vector_store %arg11[%c32_34, %c0_35], %102 {strides = array<i32>} : memref<64x32xf32, #tpu.memory_space<vmem>>, vector<8x32xf32>,
    %c40 = arith.constant 40 : index
    %c0_36 = arith.constant 0 : index
    %104 = vector.load %arg10[%c40, %c0_36] : memref<64x128xf32, #tpu.memory_space<vmem>>, vector<8x128xf32>
    %cst_37 = arith.constant dense<0.000000e+00> : vector<8x128xf32>
    %105 = tpu.matmul %102, %10, %cst_37 {dimension_numbers = #tpu.dot_dimension_numbers<[1], [0], [0], [1], [0, 0, 1, 1], [], []>} : vector<8x32xf32>, vector<32x128xf32>, vector<8x128xf32> -> vector<8x128xf32>
    %106 = arith.addf %104, %105 : vector<8x128xf32>
    %107 = arith.mulf %106, %5 : vector<8x128xf32>
    %108 = math.tanh %107 : vector<8x128xf32>
    %109 = arith.mulf %108, %5 : vector<8x128xf32>
    %110 = arith.addf %109, %8 : vector<8x128xf32>
    %111 = vector.extract_strided_slice %110 {offsets = [0, 0], sizes = [8, 32], strides = [1, 1]} : vector<8x128xf32> to vector<8x32xf32>
    %112 = vector.extract_strided_slice %110 {offsets = [0, 32], sizes = [8, 32], strides = [1, 1]} : vector<8x128xf32> to vector<8x32xf32>
    %113 = vector.extract_strided_slice %110 {offsets = [0, 64], sizes = [8, 32], strides = [1, 1]} : vector<8x128xf32> to vector<8x32xf32>
    %114 = vector.extract_strided_slice %110 {offsets = [0, 96], sizes = [8, 32], strides = [1, 1]} : vector<8x128xf32> to vector<8x32xf32>
    %115 = arith.mulf %112, %100 : vector<8x32xf32>
    %116 = arith.mulf %111, %114 : vector<8x32xf32>
    %117 = arith.addf %115, %116 : vector<8x32xf32>
    %118 = math.tanh %117 : vector<8x32xf32>
    %119 = arith.mulf %113, %118 : vector<8x32xf32>
    %c40_38 = arith.constant 40 : index
    %c0_39 = arith.constant 0 : index
    %120 = vector.load %arg11[%c40_38, %c0_39] : memref<64x32xf32, #tpu.memory_space<vmem>>, vector<8x32xf32>
    tpu.vector_store %arg11[%c40_38, %c0_39], %119 {strides = array<i32>} : memref<64x32xf32, #tpu.memory_space<vmem>>, vector<8x32xf32>,
    %c48 = arith.constant 48 : index
    %c0_40 = arith.constant 0 : index
    %121 = vector.load %arg10[%c48, %c0_40] : memref<64x128xf32, #tpu.memory_space<vmem>>, vector<8x128xf32>
    %cst_41 = arith.constant dense<0.000000e+00> : vector<8x128xf32>
    %122 = tpu.matmul %119, %10, %cst_41 {dimension_numbers = #tpu.dot_dimension_numbers<[1], [0], [0], [1], [0, 0, 1, 1], [], []>} : vector<8x32xf32>, vector<32x128xf32>, vector<8x128xf32> -> vector<8x128xf32>
    %123 = arith.addf %121, %122 : vector<8x128xf32>
    %124 = arith.mulf %123, %5 : vector<8x128xf32>
    %125 = math.tanh %124 : vector<8x128xf32>
    %126 = arith.mulf %125, %5 : vector<8x128xf32>
    %127 = arith.addf %126, %8 : vector<8x128xf32>
    %128 = vector.extract_strided_slice %127 {offsets = [0, 0], sizes = [8, 32], strides = [1, 1]} : vector<8x128xf32> to vector<8x32xf32>
    %129 = vector.extract_strided_slice %127 {offsets = [0, 32], sizes = [8, 32], strides = [1, 1]} : vector<8x128xf32> to vector<8x32xf32>
    %130 = vector.extract_strided_slice %127 {offsets = [0, 64], sizes = [8, 32], strides = [1, 1]} : vector<8x128xf32> to vector<8x32xf32>
    %131 = vector.extract_strided_slice %127 {offsets = [0, 96], sizes = [8, 32], strides = [1, 1]} : vector<8x128xf32> to vector<8x32xf32>
    %132 = arith.mulf %129, %117 : vector<8x32xf32>
    %133 = arith.mulf %128, %131 : vector<8x32xf32>
    %134 = arith.addf %132, %133 : vector<8x32xf32>
    %135 = math.tanh %134 : vector<8x32xf32>
    %136 = arith.mulf %130, %135 : vector<8x32xf32>
    %c48_42 = arith.constant 48 : index
    %c0_43 = arith.constant 0 : index
    %137 = vector.load %arg11[%c48_42, %c0_43] : memref<64x32xf32, #tpu.memory_space<vmem>>, vector<8x32xf32>
    tpu.vector_store %arg11[%c48_42, %c0_43], %136 {strides = array<i32>} : memref<64x32xf32, #tpu.memory_space<vmem>>, vector<8x32xf32>,
    %c56 = arith.constant 56 : index
    %c0_44 = arith.constant 0 : index
    %138 = vector.load %arg10[%c56, %c0_44] : memref<64x128xf32, #tpu.memory_space<vmem>>, vector<8x128xf32>
    %cst_45 = arith.constant dense<0.000000e+00> : vector<8x128xf32>
    %139 = tpu.matmul %136, %10, %cst_45 {dimension_numbers = #tpu.dot_dimension_numbers<[1], [0], [0], [1], [0, 0, 1, 1], [], []>} : vector<8x32xf32>, vector<32x128xf32>, vector<8x128xf32> -> vector<8x128xf32>
    %140 = arith.addf %138, %139 : vector<8x128xf32>
    %141 = arith.mulf %140, %5 : vector<8x128xf32>
    %142 = math.tanh %141 : vector<8x128xf32>
    %143 = arith.mulf %142, %5 : vector<8x128xf32>
    %144 = arith.addf %143, %8 : vector<8x128xf32>
    %145 = vector.extract_strided_slice %144 {offsets = [0, 0], sizes = [8, 32], strides = [1, 1]} : vector<8x128xf32> to vector<8x32xf32>
    %146 = vector.extract_strided_slice %144 {offsets = [0, 32], sizes = [8, 32], strides = [1, 1]} : vector<8x128xf32> to vector<8x32xf32>
    %147 = vector.extract_strided_slice %144 {offsets = [0, 64], sizes = [8, 32], strides = [1, 1]} : vector<8x128xf32> to vector<8x32xf32>
    %148 = vector.extract_strided_slice %144 {offsets = [0, 96], sizes = [8, 32], strides = [1, 1]} : vector<8x128xf32> to vector<8x32xf32>
    %149 = arith.mulf %146, %134 : vector<8x32xf32>
    %150 = arith.mulf %145, %148 : vector<8x32xf32>
    %151 = arith.addf %149, %150 : vector<8x32xf32>
    %152 = math.tanh %151 : vector<8x32xf32>
    %153 = arith.mulf %147, %152 : vector<8x32xf32>
    %c56_46 = arith.constant 56 : index
    %c0_47 = arith.constant 0 : index
    %154 = vector.load %arg11[%c56_46, %c0_47] : memref<64x32xf32, #tpu.memory_space<vmem>>, vector<8x32xf32>
    tpu.vector_store %arg11[%c56_46, %c0_47], %153 {strides = array<i32>} : memref<64x32xf32, #tpu.memory_space<vmem>>, vector<8x32xf32>,
    %c0_48 = arith.constant 0 : index
    %c0_49 = arith.constant 0 : index
    %155 = vector.load %arg4[%c0_48, %c0_49] : memref<32x128xf32, #tpu.memory_space<vmem>>, vector<32x128xf32>
    %c0_50 = arith.constant 0 : index
    %c0_51 = arith.constant 0 : index
    %156 = vector.load %arg5[%c0_50, %c0_51] : memref<32x128xf32, #tpu.memory_space<vmem>>, vector<32x128xf32>
    %c0_52 = arith.constant 0 : index
    %c0_53 = arith.constant 0 : index
    %157 = vector.load %arg6[%c0_52, %c0_53] : memref<1x128xf32, #tpu.memory_space<vmem>>, vector<1x128xf32>
    %c0_54 = arith.constant 0 : index
    %c0_55 = arith.constant 0 : index
    %158 = vector.load %arg11[%c0_54, %c0_55] : memref<64x32xf32, #tpu.memory_space<vmem>>, vector<64x32xf32>
    %cst_56 = arith.constant dense<0.000000e+00> : vector<64x128xf32>
    %159 = tpu.matmul %158, %155, %cst_56 {dimension_numbers = #tpu.dot_dimension_numbers<[1], [0], [0], [1], [0, 0, 1, 1], [], []>} : vector<64x32xf32>, vector<32x128xf32>, vector<64x128xf32> -> vector<64x128xf32>
    %160 = vector.broadcast %157 : vector<1x128xf32> to vector<64x128xf32>
    %161 = arith.addf %159, %160 : vector<64x128xf32>
    %c0_57 = arith.constant 0 : index
    %c0_58 = arith.constant 0 : index
    %162 = vector.load %arg10[%c0_57, %c0_58] : memref<64x128xf32, #tpu.memory_space<vmem>>, vector<64x128xf32>
    tpu.vector_store %arg10[%c0_57, %c0_58], %161 {strides = array<i32>} : memref<64x128xf32, #tpu.memory_space<vmem>>, vector<64x128xf32>,
    %cst_59 = arith.constant 0.000000e+00 : f32
    %163 = vector.broadcast %cst_59 : f32 to vector<8x32xf32>
    %cst_60 = arith.constant 0.000000e+00 : f32
    %164 = vector.broadcast %cst_60 : f32 to vector<8x32xf32>
    %c0_61 = arith.constant 0 : index
    %c0_62 = arith.constant 0 : index
    %165 = vector.load %arg10[%c0_61, %c0_62] : memref<64x128xf32, #tpu.memory_space<vmem>>, vector<8x128xf32>
    %cst_63 = arith.constant dense<0.000000e+00> : vector<8x128xf32>
    %166 = tpu.matmul %163, %156, %cst_63 {dimension_numbers = #tpu.dot_dimension_numbers<[1], [0], [0], [1], [0, 0, 1, 1], [], []>} : vector<8x32xf32>, vector<32x128xf32>, vector<8x128xf32> -> vector<8x128xf32>
    %167 = arith.addf %165, %166 : vector<8x128xf32>
    %168 = arith.mulf %167, %5 : vector<8x128xf32>
    %169 = math.tanh %168 : vector<8x128xf32>
    %170 = arith.mulf %169, %5 : vector<8x128xf32>
    %171 = arith.addf %170, %8 : vector<8x128xf32>
    %172 = vector.extract_strided_slice %171 {offsets = [0, 0], sizes = [8, 32], strides = [1, 1]} : vector<8x128xf32> to vector<8x32xf32>
    %173 = vector.extract_strided_slice %171 {offsets = [0, 32], sizes = [8, 32], strides = [1, 1]} : vector<8x128xf32> to vector<8x32xf32>
    %174 = vector.extract_strided_slice %171 {offsets = [0, 64], sizes = [8, 32], strides = [1, 1]} : vector<8x128xf32> to vector<8x32xf32>
    %175 = vector.extract_strided_slice %171 {offsets = [0, 96], sizes = [8, 32], strides = [1, 1]} : vector<8x128xf32> to vector<8x32xf32>
    %176 = arith.mulf %173, %164 : vector<8x32xf32>
    %177 = arith.mulf %172, %175 : vector<8x32xf32>
    %178 = arith.addf %176, %177 : vector<8x32xf32>
    %179 = math.tanh %178 : vector<8x32xf32>
    %180 = arith.mulf %174, %179 : vector<8x32xf32>
    %c8_64 = arith.constant 8 : index
    %c0_65 = arith.constant 0 : index
    %181 = vector.load %arg10[%c8_64, %c0_65] : memref<64x128xf32, #tpu.memory_space<vmem>>, vector<8x128xf32>
    %cst_66 = arith.constant dense<0.000000e+00> : vector<8x128xf32>
    %182 = tpu.matmul %180, %156, %cst_66 {dimension_numbers = #tpu.dot_dimension_numbers<[1], [0], [0], [1], [0, 0, 1, 1], [], []>} : vector<8x32xf32>, vector<32x128xf32>, vector<8x128xf32> -> vector<8x128xf32>
    %183 = arith.addf %181, %182 : vector<8x128xf32>
    %184 = arith.mulf %183, %5 : vector<8x128xf32>
    %185 = math.tanh %184 : vector<8x128xf32>
    %186 = arith.mulf %185, %5 : vector<8x128xf32>
    %187 = arith.addf %186, %8 : vector<8x128xf32>
    %188 = vector.extract_strided_slice %187 {offsets = [0, 0], sizes = [8, 32], strides = [1, 1]} : vector<8x128xf32> to vector<8x32xf32>
    %189 = vector.extract_strided_slice %187 {offsets = [0, 32], sizes = [8, 32], strides = [1, 1]} : vector<8x128xf32> to vector<8x32xf32>
    %190 = vector.extract_strided_slice %187 {offsets = [0, 64], sizes = [8, 32], strides = [1, 1]} : vector<8x128xf32> to vector<8x32xf32>
    %191 = vector.extract_strided_slice %187 {offsets = [0, 96], sizes = [8, 32], strides = [1, 1]} : vector<8x128xf32> to vector<8x32xf32>
    %192 = arith.mulf %189, %178 : vector<8x32xf32>
    %193 = arith.mulf %188, %191 : vector<8x32xf32>
    %194 = arith.addf %192, %193 : vector<8x32xf32>
    %195 = math.tanh %194 : vector<8x32xf32>
    %196 = arith.mulf %190, %195 : vector<8x32xf32>
    %c16_67 = arith.constant 16 : index
    %c0_68 = arith.constant 0 : index
    %197 = vector.load %arg10[%c16_67, %c0_68] : memref<64x128xf32, #tpu.memory_space<vmem>>, vector<8x128xf32>
    %cst_69 = arith.constant dense<0.000000e+00> : vector<8x128xf32>
    %198 = tpu.matmul %196, %156, %cst_69 {dimension_numbers = #tpu.dot_dimension_numbers<[1], [0], [0], [1], [0, 0, 1, 1], [], []>} : vector<8x32xf32>, vector<32x128xf32>, vector<8x128xf32> -> vector<8x128xf32>
    %199 = arith.addf %197, %198 : vector<8x128xf32>
    %200 = arith.mulf %199, %5 : vector<8x128xf32>
    %201 = math.tanh %200 : vector<8x128xf32>
    %202 = arith.mulf %201, %5 : vector<8x128xf32>
    %203 = arith.addf %202, %8 : vector<8x128xf32>
    %204 = vector.extract_strided_slice %203 {offsets = [0, 0], sizes = [8, 32], strides = [1, 1]} : vector<8x128xf32> to vector<8x32xf32>
    %205 = vector.extract_strided_slice %203 {offsets = [0, 32], sizes = [8, 32], strides = [1, 1]} : vector<8x128xf32> to vector<8x32xf32>
    %206 = vector.extract_strided_slice %203 {offsets = [0, 64], sizes = [8, 32], strides = [1, 1]} : vector<8x128xf32> to vector<8x32xf32>
    %207 = vector.extract_strided_slice %203 {offsets = [0, 96], sizes = [8, 32], strides = [1, 1]} : vector<8x128xf32> to vector<8x32xf32>
    %208 = arith.mulf %205, %194 : vector<8x32xf32>
    %209 = arith.mulf %204, %207 : vector<8x32xf32>
    %210 = arith.addf %208, %209 : vector<8x32xf32>
    %211 = math.tanh %210 : vector<8x32xf32>
    %212 = arith.mulf %206, %211 : vector<8x32xf32>
    %c24_70 = arith.constant 24 : index
    %c0_71 = arith.constant 0 : index
    %213 = vector.load %arg10[%c24_70, %c0_71] : memref<64x128xf32, #tpu.memory_space<vmem>>, vector<8x128xf32>
    %cst_72 = arith.constant dense<0.000000e+00> : vector<8x128xf32>
    %214 = tpu.matmul %212, %156, %cst_72 {dimension_numbers = #tpu.dot_dimension_numbers<[1], [0], [0], [1], [0, 0, 1, 1], [], []>} : vector<8x32xf32>, vector<32x128xf32>, vector<8x128xf32> -> vector<8x128xf32>
    %215 = arith.addf %213, %214 : vector<8x128xf32>
    %216 = arith.mulf %215, %5 : vector<8x128xf32>
    %217 = math.tanh %216 : vector<8x128xf32>
    %218 = arith.mulf %217, %5 : vector<8x128xf32>
    %219 = arith.addf %218, %8 : vector<8x128xf32>
    %220 = vector.extract_strided_slice %219 {offsets = [0, 0], sizes = [8, 32], strides = [1, 1]} : vector<8x128xf32> to vector<8x32xf32>
    %221 = vector.extract_strided_slice %219 {offsets = [0, 32], sizes = [8, 32], strides = [1, 1]} : vector<8x128xf32> to vector<8x32xf32>
    %222 = vector.extract_strided_slice %219 {offsets = [0, 64], sizes = [8, 32], strides = [1, 1]} : vector<8x128xf32> to vector<8x32xf32>
    %223 = vector.extract_strided_slice %219 {offsets = [0, 96], sizes = [8, 32], strides = [1, 1]} : vector<8x128xf32> to vector<8x32xf32>
    %224 = arith.mulf %221, %210 : vector<8x32xf32>
    %225 = arith.mulf %220, %223 : vector<8x32xf32>
    %226 = arith.addf %224, %225 : vector<8x32xf32>
    %227 = math.tanh %226 : vector<8x32xf32>
    %228 = arith.mulf %222, %227 : vector<8x32xf32>
    %c32_73 = arith.constant 32 : index
    %c0_74 = arith.constant 0 : index
    %229 = vector.load %arg10[%c32_73, %c0_74] : memref<64x128xf32, #tpu.memory_space<vmem>>, vector<8x128xf32>
    %cst_75 = arith.constant dense<0.000000e+00> : vector<8x128xf32>
    %230 = tpu.matmul %228, %156, %cst_75 {dimension_numbers = #tpu.dot_dimension_numbers<[1], [0], [0], [1], [0, 0, 1, 1], [], []>} : vector<8x32xf32>, vector<32x128xf32>, vector<8x128xf32> -> vector<8x128xf32>
    %231 = arith.addf %229, %230 : vector<8x128xf32>
    %232 = arith.mulf %231, %5 : vector<8x128xf32>
    %233 = math.tanh %232 : vector<8x128xf32>
    %234 = arith.mulf %233, %5 : vector<8x128xf32>
    %235 = arith.addf %234, %8 : vector<8x128xf32>
    %236 = vector.extract_strided_slice %235 {offsets = [0, 0], sizes = [8, 32], strides = [1, 1]} : vector<8x128xf32> to vector<8x32xf32>
    %237 = vector.extract_strided_slice %235 {offsets = [0, 32], sizes = [8, 32], strides = [1, 1]} : vector<8x128xf32> to vector<8x32xf32>
    %238 = vector.extract_strided_slice %235 {offsets = [0, 64], sizes = [8, 32], strides = [1, 1]} : vector<8x128xf32> to vector<8x32xf32>
    %239 = vector.extract_strided_slice %235 {offsets = [0, 96], sizes = [8, 32], strides = [1, 1]} : vector<8x128xf32> to vector<8x32xf32>
    %240 = arith.mulf %237, %226 : vector<8x32xf32>
    %241 = arith.mulf %236, %239 : vector<8x32xf32>
    %242 = arith.addf %240, %241 : vector<8x32xf32>
    %243 = math.tanh %242 : vector<8x32xf32>
    %244 = arith.mulf %238, %243 : vector<8x32xf32>
    %c40_76 = arith.constant 40 : index
    %c0_77 = arith.constant 0 : index
    %245 = vector.load %arg10[%c40_76, %c0_77] : memref<64x128xf32, #tpu.memory_space<vmem>>, vector<8x128xf32>
    %cst_78 = arith.constant dense<0.000000e+00> : vector<8x128xf32>
    %246 = tpu.matmul %244, %156, %cst_78 {dimension_numbers = #tpu.dot_dimension_numbers<[1], [0], [0], [1], [0, 0, 1, 1], [], []>} : vector<8x32xf32>, vector<32x128xf32>, vector<8x128xf32> -> vector<8x128xf32>
    %247 = arith.addf %245, %246 : vector<8x128xf32>
    %248 = arith.mulf %247, %5 : vector<8x128xf32>
    %249 = math.tanh %248 : vector<8x128xf32>
    %250 = arith.mulf %249, %5 : vector<8x128xf32>
    %251 = arith.addf %250, %8 : vector<8x128xf32>
    %252 = vector.extract_strided_slice %251 {offsets = [0, 0], sizes = [8, 32], strides = [1, 1]} : vector<8x128xf32> to vector<8x32xf32>
    %253 = vector.extract_strided_slice %251 {offsets = [0, 32], sizes = [8, 32], strides = [1, 1]} : vector<8x128xf32> to vector<8x32xf32>
    %254 = vector.extract_strided_slice %251 {offsets = [0, 64], sizes = [8, 32], strides = [1, 1]} : vector<8x128xf32> to vector<8x32xf32>
    %255 = vector.extract_strided_slice %251 {offsets = [0, 96], sizes = [8, 32], strides = [1, 1]} : vector<8x128xf32> to vector<8x32xf32>
    %256 = arith.mulf %253, %242 : vector<8x32xf32>
    %257 = arith.mulf %252, %255 : vector<8x32xf32>
    %258 = arith.addf %256, %257 : vector<8x32xf32>
    %259 = math.tanh %258 : vector<8x32xf32>
    %260 = arith.mulf %254, %259 : vector<8x32xf32>
    %c48_79 = arith.constant 48 : index
    %c0_80 = arith.constant 0 : index
    %261 = vector.load %arg10[%c48_79, %c0_80] : memref<64x128xf32, #tpu.memory_space<vmem>>, vector<8x128xf32>
    %cst_81 = arith.constant dense<0.000000e+00> : vector<8x128xf32>
    %262 = tpu.matmul %260, %156, %cst_81 {dimension_numbers = #tpu.dot_dimension_numbers<[1], [0], [0], [1], [0, 0, 1, 1], [], []>} : vector<8x32xf32>, vector<32x128xf32>, vector<8x128xf32> -> vector<8x128xf32>
    %263 = arith.addf %261, %262 : vector<8x128xf32>
    %264 = arith.mulf %263, %5 : vector<8x128xf32>
    %265 = math.tanh %264 : vector<8x128xf32>
    %266 = arith.mulf %265, %5 : vector<8x128xf32>
    %267 = arith.addf %266, %8 : vector<8x128xf32>
    %268 = vector.extract_strided_slice %267 {offsets = [0, 0], sizes = [8, 32], strides = [1, 1]} : vector<8x128xf32> to vector<8x32xf32>
    %269 = vector.extract_strided_slice %267 {offsets = [0, 32], sizes = [8, 32], strides = [1, 1]} : vector<8x128xf32> to vector<8x32xf32>
    %270 = vector.extract_strided_slice %267 {offsets = [0, 64], sizes = [8, 32], strides = [1, 1]} : vector<8x128xf32> to vector<8x32xf32>
    %271 = vector.extract_strided_slice %267 {offsets = [0, 96], sizes = [8, 32], strides = [1, 1]} : vector<8x128xf32> to vector<8x32xf32>
    %272 = arith.mulf %269, %258 : vector<8x32xf32>
    %273 = arith.mulf %268, %271 : vector<8x32xf32>
    %274 = arith.addf %272, %273 : vector<8x32xf32>
    %275 = math.tanh %274 : vector<8x32xf32>
    %276 = arith.mulf %270, %275 : vector<8x32xf32>
    %c56_82 = arith.constant 56 : index
    %c0_83 = arith.constant 0 : index
    %277 = vector.load %arg10[%c56_82, %c0_83] : memref<64x128xf32, #tpu.memory_space<vmem>>, vector<8x128xf32>
    %cst_84 = arith.constant dense<0.000000e+00> : vector<8x128xf32>
    %278 = tpu.matmul %276, %156, %cst_84 {dimension_numbers = #tpu.dot_dimension_numbers<[1], [0], [0], [1], [0, 0, 1, 1], [], []>} : vector<8x32xf32>, vector<32x128xf32>, vector<8x128xf32> -> vector<8x128xf32>
    %279 = arith.addf %277, %278 : vector<8x128xf32>
    %280 = arith.mulf %279, %5 : vector<8x128xf32>
    %281 = math.tanh %280 : vector<8x128xf32>
    %282 = arith.mulf %281, %5 : vector<8x128xf32>
    %283 = arith.addf %282, %8 : vector<8x128xf32>
    %284 = vector.extract_strided_slice %283 {offsets = [0, 0], sizes = [8, 32], strides = [1, 1]} : vector<8x128xf32> to vector<8x32xf32>
    %285 = vector.extract_strided_slice %283 {offsets = [0, 32], sizes = [8, 32], strides = [1, 1]} : vector<8x128xf32> to vector<8x32xf32>
    %286 = vector.extract_strided_slice %283 {offsets = [0, 64], sizes = [8, 32], strides = [1, 1]} : vector<8x128xf32> to vector<8x32xf32>
    %287 = vector.extract_strided_slice %283 {offsets = [0, 96], sizes = [8, 32], strides = [1, 1]} : vector<8x128xf32> to vector<8x32xf32>
    %288 = arith.mulf %285, %274 : vector<8x32xf32>
    %289 = arith.mulf %284, %287 : vector<8x32xf32>
    %290 = arith.addf %288, %289 : vector<8x32xf32>
    %291 = math.tanh %290 : vector<8x32xf32>
    %292 = arith.mulf %286, %291 : vector<8x32xf32>
    %c0_85 = arith.constant 0 : index
    %c0_86 = arith.constant 0 : index
    %293 = vector.load %arg7[%c0_85, %c0_86] : memref<32x128xf32, #tpu.memory_space<vmem>>, vector<32x128xf32>
    %cst_87 = arith.constant dense<0.000000e+00> : vector<8x128xf32>
    %294 = tpu.matmul %292, %293, %cst_87 {dimension_numbers = #tpu.dot_dimension_numbers<[1], [0], [0], [1], [0, 0, 1, 1], [], []>} : vector<8x32xf32>, vector<32x128xf32>, vector<8x128xf32> -> vector<8x128xf32>
    %c0_88 = arith.constant 0 : index
    %c0_89 = arith.constant 0 : index
    %295 = vector.load %arg8[%c0_88, %c0_89] : memref<1x128xf32, #tpu.memory_space<vmem>>, vector<1x128xf32>
    %296 = vector.broadcast %295 : vector<1x128xf32> to vector<8x128xf32>
    %297 = arith.addf %294, %296 : vector<8x128xf32>
    %c0_90 = arith.constant 0 : index
    %c0_91 = arith.constant 0 : index
    %298 = vector.load %arg9[%c0_90, %c0_91] : memref<8x128xf32, #tpu.memory_space<vmem>>, vector<8x128xf32>
    tpu.vector_store %arg9[%c0_90, %c0_91], %297 {strides = array<i32>} : memref<8x128xf32, #tpu.memory_space<vmem>>, vector<8x128xf32>,
    return
  }
}

</mosaic_0001>

<bundles_post_ra>
// kernel: tpu_custom_call.1
= control target key start
LH: loop header
LB: loop body
LE: loop exit
PB: predicated region body
PF: predicated region fallthrough
CT: control target
= control target key end

     0   :  { %14 = vsyncpa [#allocation5], 0  ;;  %s3502_s0 = inlined_call_operand.hbm [shape: f32[64,16], index: 0, kind: input, shape index: {}]   ;;  %s3503_s1 = inlined_call_operand.hbm [shape: f32[16,128], index: 1, kind: input, shape index: {}]   ;;  %s3504_s2 = inlined_call_operand.hbm [shape: f32[32,128], index: 2, kind: input, shape index: {}]   ;;  %s3505_s3 = inlined_call_operand.hbm [shape: f32[1,128], index: 3, kind: input, shape index: {}]   ;;  %s3506_s4 = inlined_call_operand.hbm [shape: f32[32,128], index: 4, kind: input, shape index: {}]   ;;  %s3507_s5 = inlined_call_operand.hbm [shape: f32[32,128], index: 5, kind: input, shape index: {}]   ;;  %s3508_s6 = inlined_call_operand.hbm [shape: f32[1,128], index: 6, kind: input, shape index: {}]   ;;  %s3509_s7 = inlined_call_operand.hbm [shape: f32[32,128], index: 7, kind: input, shape index: {}]   ;;  %s3510_s8 = inlined_call_operand.hbm [shape: f32[1,128], index: 8, kind: input, shape index: {}]   ;;  %s3511_s9 = inlined_call_operand.hbm [shape: f32[8,128], index: 9, kind: output, shape index: {}]  }
   0x1   :  { %15 = vsyncpa [#allocation8], 0 }
   0x2   :  { %16 = vsyncpa [#allocation11], 0 }
   0x3   :  { %17 = vsyncpa [#allocation14], 0 }
   0x4   :  { %18 = vsyncpa [#allocation17], 0 }
   0x5   :  { %19 = vsyncpa [#allocation6], 0  ;;  %s2952_s30 = smov [#allocation7]   ;;  %s2953_s11 = smov [#allocation10]  }
   0x6   :  { %s37_s10 = sshll.u32 %s2952_s30, 4  ;;  %s62_s12 = sshll.u32 %s2953_s11, 4  ;;  %s38_s10 = int_to_ptr.vmem [resolvable:$true] %s37_s10  ;;  %s3020_s12 = int_to_ptr.vmem [resolvable:$true] %s62_s12 }
   0x7   :  { %s2720_s15 = scalar_lea.hbm %s3503_s1, 256 }
   0x8   :  { %p2721_p0 = scmp.ne.s32.totalorder %s3503_s1, %s2720_s15  ;;  %p2724_p1 = scmp.lt.u32.totalorder %s2720_s15, %s3503_s1 }
   0xa   :  { %p2726_p2 = pnand %p2724_p1, %p2721_p0 }
   0xc   :  { %2729 = shalt.err (!%p2726_p2)
}
   0xd   :  { %s2730_s20 = scalar_lea.vmem %s38_s10, 256  ;;  %p2735_p4 = scmp.lt.s32.totalorder %s38_s10, %s38_s10 }
   0xe   :  { %p2731_p3 = scmp.ne.s32.totalorder %s38_s10, %s2730_s20  ;;  %p2736_p5 = scmp.lt.s32.totalorder %s2730_s20, %s2730_s20 }
  0x10   :  { %p2737_p6 = por %p2736_p5, %p2735_p4 }
  0x12   :  { %p2738_p7 = pnand %p2737_p6, %p2731_p3 }
  0x14   :  { %2741 = shalt.err (!%p2738_p7)
}
  0x15   :  { %s2954_s21 = smov 128   ;;  %s2955_s22 = smov 8  }
  0x16   :  { %43 = dma.hbm_to_vmem [thread:$0]  %s3503_s1, 256, %s38_s10, [#allocation8], %s2954_s21, %s2954_s21, %s2955_s22  }
  0x17   :  { %s2742_s27 = scalar_lea.hbm %s3505_s3, 16 }
  0x18   :  { %p2743_p8 = scmp.ne.s32.totalorder %s3505_s3, %s2742_s27  ;;  %p2746_p9 = scmp.lt.u32.totalorder %s2742_s27, %s3505_s3 }
  0x1a   :  { %p2748_p10 = pnand %p2746_p9, %p2743_p8 }
  0x1c   :  { %2751 = shalt.err (!%p2748_p10)
}
  0x1d   :  { %s2752_s13 = scalar_lea.vmem %s3020_s12, 16  ;;  %s2756_s1 = scalar_lea.vmem %s3020_s12, 32 }
  0x1e   :  { %p2753_p11 = scmp.ne.s32.totalorder %s3020_s12, %s2752_s13  ;;  %p2757_p12 = scmp.lt.s32.totalorder %s3020_s12, %s3020_s12 }
  0x1f   :  { %p2758_p13 = scmp.lt.s32.totalorder %s2756_s1, %s2752_s13 }
  0x21   :  { %p2759_p0 = por %p2758_p13, %p2757_p12 }
  0x23   :  { %p2760_p1 = pnand %p2759_p0, %p2753_p11 }
  0x25   :  { %2763 = shalt.err (!%p2760_p1)
}
  0x26   :  { %65 = dma.hbm_to_vmem [thread:$0]  %s3505_s3, 16, %s3020_s12, [#allocation11]  }
  0x27   :  { %s2956_s15 = smov [#allocation13]   ;;  %s2957_s17 = smov [#allocation16]  }
  0x28   :  { %s83_s16 = sshll.u32 %s2956_s15, 4  ;;  %s105_s18 = sshll.u32 %s2957_s17, 4  ;;  %s84_s16 = int_to_ptr.vmem [resolvable:$true] %s83_s16  ;;  %s3055_s18 = int_to_ptr.vmem [resolvable:$true] %s105_s18 }
  0x29   :  { %s2764_s23 = scalar_lea.hbm %s3507_s5, 512 }
  0x2a   :  { %p2765_p2 = scmp.ne.s32.totalorder %s3507_s5, %s2764_s23  ;;  %p2768_p3 = scmp.lt.u32.totalorder %s2764_s23, %s3507_s5 }
  0x2c   :  { %p2770_p4 = pnand %p2768_p3, %p2765_p2 }
  0x2e   :  { %2773 = shalt.err (!%p2770_p4)
}
  0x2f   :  { %s2774_s3 = scalar_lea.vmem %s84_s16, 512  ;;  %p2779_p6 = scmp.lt.s32.totalorder %s84_s16, %s84_s16 }
  0x30   :  { %p2775_p5 = scmp.ne.s32.totalorder %s84_s16, %s2774_s3  ;;  %p2780_p7 = scmp.lt.s32.totalorder %s2774_s3, %s2774_s3 }
  0x32   :  { %p2781_p8 = por %p2780_p7, %p2779_p6 }
  0x34   :  { %p2782_p9 = pnand %p2781_p8, %p2775_p5 }
  0x36   :  { %2785 = shalt.err (!%p2782_p9)
}
  0x37   :  { %89 = dma.hbm_to_vmem [thread:$0]  %s3507_s5, 512, %s84_s16, [#allocation14], %s2954_s21, %s2954_s21, %s2955_s22  }
  0x38   :  { %s2786_s11 = scalar_lea.hbm %s3509_s7, 512 }
  0x39   :  { %p2787_p10 = scmp.ne.s32.totalorder %s3509_s7, %s2786_s11  ;;  %p2790_p11 = scmp.lt.u32.totalorder %s2786_s11, %s3509_s7 }
  0x3b   :  { %p2792_p12 = pnand %p2790_p11, %p2787_p10 }
  0x3d   :  { %2795 = shalt.err (!%p2792_p12)
}
  0x3e   :  { %s2796_s15 = scalar_lea.vmem %s3055_s18, 512  ;;  %p2801_p0 = scmp.lt.s32.totalorder %s3055_s18, %s3055_s18 }
  0x3f   :  { %p2797_p13 = scmp.ne.s32.totalorder %s3055_s18, %s2796_s15  ;;  %p2802_p1 = scmp.lt.s32.totalorder %s2796_s15, %s2796_s15 }
  0x41   :  { %p2803_p2 = por %p2802_p1, %p2801_p0 }
  0x43   :  { %p2804_p3 = pnand %p2803_p2, %p2797_p13 }
  0x45   :  { %2807 = shalt.err (!%p2804_p3)
}
  0x46   :  { %111 = dma.hbm_to_vmem [thread:$0]  %s3509_s7, 512, %s3055_s18, [#allocation17], %s2954_s21, %s2954_s21, %s2955_s22  }
  0x47   :  { %s2958_s17 = smov [#allocation4]   ;;  %s2959_s20 = smov [#allocation9]  }
  0x48   :  { %s25_s19 = sshll.u32 %s2958_s17, 4  ;;  %s49_s23 = sshll.u32 %s2959_s20, 4  ;;  %s26_s19 = int_to_ptr.vmem [resolvable:$true] %s25_s19  ;;  %s3092_s23 = int_to_ptr.vmem [resolvable:$true] %s49_s23 }
  0x49   :  { %s2808_s26 = scalar_lea.hbm %s3502_s0, 1024 }
  0x4a   :  { %p2809_p4 = scmp.ne.s32.totalorder %s3502_s0, %s2808_s26  ;;  %p2812_p5 = scmp.lt.u32.totalorder %s2808_s26, %s3502_s0 }
  0x4c   :  { %p2814_p6 = pnand %p2812_p5, %p2809_p4 }
  0x4e   :  { %2817 = shalt.err (!%p2814_p6)
}
  0x4f   :  { %s2818_s7 = scalar_lea.vmem %s26_s19, 1024  ;;  %p2823_p8 = scmp.lt.s32.totalorder %s26_s19, %s26_s19 }
  0x50   :  { %p2819_p7 = scmp.ne.s32.totalorder %s26_s19, %s2818_s7  ;;  %p2824_p9 = scmp.lt.s32.totalorder %s2818_s7, %s2818_s7 }
  0x52   :  { %p2825_p10 = por %p2824_p9, %p2823_p8 }
  0x54   :  { %p2826_p11 = pnand %p2825_p10, %p2819_p7 }
  0x56   :  { %2829 = shalt.err (!%p2826_p11)
}
  0x57   :  { %31 = dma.hbm_to_vmem [thread:$0]  %s3502_s0, 1024, %s26_s19, [#allocation5], %s2954_s21, %s2954_s21, %s2955_s22  }
  0x58   :  { %s2830_s13 = scalar_lea.hbm %s3504_s2, 512 }
  0x59   :  { %p2831_p12 = scmp.ne.s32.totalorder %s3504_s2, %s2830_s13  ;;  %p2834_p13 = scmp.lt.u32.totalorder %s2830_s13, %s3504_s2 }
  0x5b   :  { %p2836_p0 = pnand %p2834_p13, %p2831_p12 }
  0x5d   :  { %2839 = shalt.err (!%p2836_p0)
}
  0x5e   :  { %s2840_s5 = scalar_lea.vmem %s3092_s23, 512  ;;  %p2845_p2 = scmp.lt.s32.totalorder %s3092_s23, %s3092_s23 }
  0x5f   :  { %p2841_p1 = scmp.ne.s32.totalorder %s3092_s23, %s2840_s5  ;;  %p2846_p3 = scmp.lt.s32.totalorder %s2840_s5, %s2840_s5 }
  0x61   :  { %p2847_p4 = por %p2846_p3, %p2845_p2 }
  0x63   :  { %p2848_p5 = pnand %p2847_p4, %p2841_p1 }
  0x65   :  { %2851 = shalt.err (!%p2848_p5)
}
  0x66   :  { %55 = dma.hbm_to_vmem [thread:$0]  %s3504_s2, 512, %s3092_s23, [#allocation8], %s2954_s21, %s2954_s21, %s2955_s22  }
  0x67   :  { %s2960_s17 = smov [#allocation12]   ;;  %s2961_s20 = smov [#allocation15]  }
  0x68   :  { %s71_s19 = sshll.u32 %s2960_s17, 4  ;;  %s96_s24 = sshll.u32 %s2961_s20, 4  ;;  %s72_s19 = int_to_ptr.vmem [resolvable:$true] %s71_s19  ;;  %s97_s24 = int_to_ptr.vmem [resolvable:$true] %s96_s24 }
  0x69   :  { %s2852_s27 = scalar_lea.hbm %s3506_s4, 512 }
  0x6a   :  { %p2853_p6 = scmp.ne.s32.totalorder %s3506_s4, %s2852_s27  ;;  %p2856_p7 = scmp.lt.u32.totalorder %s2852_s27, %s3506_s4 }
  0x6c   :  { %p2858_p8 = pnand %p2856_p7, %p2853_p6 }
  0x6e   :  { %2861 = shalt.err (!%p2858_p8)
}
  0x6f   :  { %s2862_s2 = scalar_lea.vmem %s72_s19, 512  ;;  %p2867_p10 = scmp.lt.s32.totalorder %s72_s19, %s72_s19 }
  0x70   :  { %p2863_p9 = scmp.ne.s32.totalorder %s72_s19, %s2862_s2  ;;  %p2868_p11 = scmp.lt.s32.totalorder %s2862_s2, %s2862_s2 }
  0x72   :  { %p2869_p12 = por %p2868_p11, %p2867_p10 }
  0x74   :  { %p2870_p13 = pnand %p2869_p12, %p2863_p9 }
  0x76   :  { %2873 = shalt.err (!%p2870_p13)
}
  0x77   :  { %77 = dma.hbm_to_vmem [thread:$0]  %s3506_s4, 512, %s72_s19, [#allocation11], %s2954_s21, %s2954_s21, %s2955_s22  }
  0x78   :  { %s2874_s11 = scalar_lea.hbm %s3508_s6, 16 }
  0x79   :  { %p2875_p0 = scmp.ne.s32.totalorder %s3508_s6, %s2874_s11  ;;  %p2878_p1 = scmp.lt.u32.totalorder %s2874_s11, %s3508_s6 }
  0x7b   :  { %p2880_p2 = pnand %p2878_p1, %p2875_p0 }
  0x7d   :  { %2883 = shalt.err (!%p2880_p2)
}
  0x7e   :  { %s2884_s15 = scalar_lea.vmem %s97_s24, 16  ;;  %s2888_s5 = scalar_lea.vmem %s97_s24, 32 }
  0x7f   :  { %p2885_p3 = scmp.ne.s32.totalorder %s97_s24, %s2884_s15  ;;  %p2889_p4 = scmp.lt.s32.totalorder %s97_s24, %s97_s24 }
  0x80   :  { %p2890_p5 = scmp.lt.s32.totalorder %s2888_s5, %s2884_s15 }
  0x82   :  { %p2891_p6 = por %p2890_p5, %p2889_p4 }
  0x84   :  { %p2892_p7 = pnand %p2891_p6, %p2885_p3 }
  0x86   :  { %2895 = shalt.err (!%p2892_p7)
}
  0x87   :  { %99 = dma.hbm_to_vmem [thread:$0]  %s3508_s6, 16, %s97_s24, [#allocation14]  }
  0x88   :  { %s2962_s22 = smov [#allocation18]   ;;  %s2896_s19 = scalar_lea.hbm %s3510_s8, 16 }
  0x89   :  { %s118_s0 = sshll.u32 %s2962_s22, 4  ;;  %p2897_p8 = scmp.ne.s32.totalorder %s3510_s8, %s2896_s19  ;;  %s119_s0 = int_to_ptr.vmem [resolvable:$true] %s118_s0 }
  0x8a   :  { %p2900_p9 = scmp.lt.u32.totalorder %s2896_s19, %s3510_s8 }
  0x8c   :  { %p2902_p10 = pnand %p2900_p9, %p2897_p8 }
  0x8e   :  { %2905 = shalt.err (!%p2902_p10)
}
  0x8f   :  { %s2906_s3 = scalar_lea.vmem %s119_s0, 16  ;;  %s2910_s6 = scalar_lea.vmem %s119_s0, 32 }
  0x90   :  { %p2907_p11 = scmp.ne.s32.totalorder %s119_s0, %s2906_s3  ;;  %p2911_p12 = scmp.lt.s32.totalorder %s119_s0, %s119_s0 }
  0x91   :  { %p2912_p13 = scmp.lt.s32.totalorder %s2910_s6, %s2906_s3 }
  0x93   :  { %p2913_p0 = por %p2912_p13, %p2911_p12 }
  0x95   :  { %p2914_p1 = pnand %p2913_p0, %p2907_p11 }
  0x97   :  { %2917 = shalt.err (!%p2914_p1)
}
  0x98   :  { %121 = dma.hbm_to_vmem [thread:$0]  %s3510_s8, 16, %s119_s0, [#allocation17]  }
  0x99   :  { %2940 = dma.done.wait [#allocation5], 1024  }
  0x9a   :  { %2941 = vsyncadd [#allocation5], 4294966272 }
  0x9b   :  { %2942 = dma.done.wait [#allocation8], 768  }
  0x9c   :  { %2943 = vsyncadd [#allocation8], 4294966528 }
  0x9d   :  { %2944 = dma.done.wait [#allocation11], 528  }
  0x9e   :  { %2945 = vsyncadd [#allocation11], 4294966768 }
  0x9f   :  { %2946 = dma.done.wait [#allocation14], 528  }
  0xa0   :  { %2947 = vsyncadd [#allocation14], 4294966768 }
  0xa1   :  { %2948 = dma.done.wait [#allocation17], 528  }
  0xa2   :  { %2949 = vsyncadd [#allocation17], 4294966768  ;;  %v2963_v0 = vmov 0.0|0.0   ;;  %vm2964_vm0 = vmmov 0   ;;  %v2965_v1 = vmov 0.0   ;;  %vm175_vm1 = vcmask 130048  }
  0xa3   :  { %2528 = vmatprep.subr.bf16.mxu1 %v2963_v0  ;;  %2325 = vmatprep.mubr.msk.f32.mxu1 %vm2964_vm0, %v2965_v1  ;;  %v154_v2 = vld [vmem:[#allocation7] sm:$0xff]  ;;  %v155_v3 = vld [vmem:[#allocation7 + $0x8] sm:$0xff]  ;;  %v156_v4 = vld [vmem:[#allocation9] sm:$0xff]  ;;  %v149_v13 = vlaneseq  ;;  %v2966_v19 = vmov 0.5   ;;  %s2967_s8 = smov 32   ;;  %s2968_s28 = smov 64  }
  0xa4   :  { %v2524_v5 = vpack.c.bf16 %v155_v3, %v154_v2  ;;  %v157_v6 = vld [vmem:[#allocation9 + $0x8] sm:$0xff]  ;;  %v161_v7 = vld [vmem:[#allocation4] sm:$0xff]  ;;  %v159_v10 = vld [vmem:[#allocation9 + $0x18] sm:$0xff]  ;;  %vm314_vm3 = vcmask 261120   ;;  %s2969_s7 = smov [#allocation19]  }
  0xa5   :  { %v3171_v8 = vpack.c.bf16 %v157_v6, %v156_v4  ;;  %2305 = vmatprep.mubr.msk.f32.mxu0 %vm175_vm1, %v161_v7  ;;  %v158_v9 = vld [vmem:[#allocation9 + $0x10] sm:$0xff]  ;;  %v162_v11 = vld [vmem:[#allocation4 + $0x8] sm:$0xff]  ;;  %v150_v14 = vand.u32 127, %v149_v13  ;;  %v3193_v15 = vld [vmem:[#allocation10] ss:$0 sm:$0xff]  ;;  %s2147_s2 = sshll.u32 %s2969_s7, 4  ;;  %s2148_s2 = int_to_ptr.vmem [resolvable:$true] %s2147_s2 }
  0xa6   :  { %2525 = vmatprep.subr.bf16.mxu0 %v2524_v5  ;;  %v3175_v12 = vpack.c.bf16 %v159_v10, %v158_v9  ;;  %v163_v51 = vld [vmem:[#allocation4 + $0x10] sm:$0xff]  ;;  %v164_v52 = vld [vmem:[#allocation4 + $0x18] sm:$0xff]  ;;  %v165_v53 = vld [vmem:[#allocation4 + $0x20] sm:$0xff]  ;;  %s2918_s23 = scalar_lea.vmem %s2148_s2, 128  ;;  %p2923_p3 = scmp.lt.s32.totalorder %s2148_s2, %s2148_s2 }
  0xa7   :  { %2530 = vmatpush3.bf16.msra.mxu1 %v3171_v8  ;;  %2527 = vmatpush3.bf16.msra.mxu0 %v2524_v5  ;;  %vm151_vm2 = vcmp.ge.s32.totalorder %v150_v14, 96  ;;  %v166_v54 = vld [vmem:[#allocation4 + $0x28] sm:$0xff]  ;;  %v167_v55 = vld [vmem:[#allocation4 + $0x30] sm:$0xff]  ;;  %v168_v56 = vld [vmem:[#allocation4 + $0x38] sm:$0xff]  ;;  %p2919_p2 = scmp.ne.s32.totalorder %s2148_s2, %s2918_s23  ;;  %p2924_p4 = scmp.lt.s32.totalorder %s2918_s23, %s2918_s23 }
  0xa8   :  { %2531 = vmatprep.subr.bf16.mxu1 %v2963_v0  ;;  %2540 = vmatprep.subr.bf16.mxu0 %v2963_v0  ;;  %v3196_v20 = vsel %vm151_vm2, 1.0, %v2966_v19  ;;  %v3199_v26 = vsel %vm151_vm2, 0.0, %v2966_v19 }
  0xa9   :  { %p2925_p5 = por %p2924_p4, %p2923_p3 }
  0xaa   :  { %2306 = vmatmul.mubr.msk.f32.vlgmr.msra.gmra.mrb[0].mxu0 %vm175_vm1, %v162_v11 }
  0xab   :  { %2533 = vmatpush3.bf16.msra.mxu1 %v3175_v12  ;;  %2542 = vmatpush3.bf16.msra.mxu0 %v3171_v8  ;;  %p2926_p6 = pnand %p2925_p5, %p2919_p2 }
  0xac   :  { %2534 = vmatprep.subr.bf16.mxu1 %v2963_v0  ;;  %2543 = vmatprep.subr.bf16.mxu0 %v2963_v0 }
  0xad   :  { %2308 = vmatprep.mubr.msk.f32.mxu0 %vm175_vm1, %v163_v51 }
  0xae   :  { %2326 = vmatmul.mubr.f32.vlgmr.msra.gmra.mrb[0].mxu1 %v2965_v1  ;;  %2309 = vmatmul.mubr.msk.f32.gmra.mrb[2].mxu0 %vm175_vm1, %v164_v52 }
  0xaf   :  { %2536 = vmatpush3.bf16.msra.mxu1 %v3171_v8  ;;  %2336 = vmatprep.mubr.msk.f32.mxu1 %vm2964_vm0, %v2965_v1 }
  0xb0   :  { %2537 = vmatprep.subr.bf16.mxu1 %v2963_v0  ;;  %2545 = vmatpush3.bf16.msra.mxu0 %v3175_v12 }
  0xb1   :  { %2552 = vmatprep.subr.bf16.mxu0 %v2963_v0  ;;  %2311 = vmatprep.mubr.msk.f32.mxu0 %vm175_vm1, %v165_v53 }
  0xb2   :  { %2312 = vmatmul.mubr.msk.f32.gmra.mrb[4].mxu0 %vm175_vm1, %v166_v54 }
  0xb3   :  { %2539 = vmatpush3.bf16.msra.mxu1 %v3175_v12  ;;  %2314 = vmatprep.mubr.msk.f32.mxu0 %vm175_vm1, %v167_v55 }
  0xb4   :  { %2546 = vmatprep.subr.bf16.mxu1 %v2963_v0 }
  0xb6   :  { %2315 = vmatmul.mubr.msk.f32.gmra.mrb[6].mxu0 %vm175_vm1, %v168_v56 }
  0xb7   :  { %2347 = vmatprep.mubr.msk.f32.mxu0 %vm2964_vm0, %v2965_v1 }
 0x17d   :  { %v2307_v16 = vpop.f32.mrb[0].mxu0 }
 0x17e   :  { %v266_v17 = vpop.f32.mrb[1].mxu0  ;;  %v272_v38 = vadd.f32 %v2307_v16, %v3193_v15 }
 0x17f   :  { %v267_v18 = vadd.f32 %v3193_v15, %v266_v17 }
 0x181   :  { %v384_v21 = vpop.f32.mrb[0].mxu1  ;;  %v2310_v60 = vpop.f32.mrb[2].mxu0 }
 0x182   :  { %v388_v22 = vadd.f32 %v384_v21, %v267_v18  ;;  %v2327_v23 = vpop.f32.mrb[1].mxu1  ;;  %v276_v61 = vpop.f32.mrb[3].mxu0 }
 0x183   :  { %v277_v5 = vadd.f32 %v3193_v15, %v276_v61 }
 0x184   :  { %v389_v24 = vmul.f32 %v388_v22, %v3196_v20 }
 0x185   :  { %v3231_v62 = vpop.f32.mrb[4].mxu0 }
 0x186   :  { %2656 = vtanh.f32 %v389_v24  ;;  %v3233_v63 = vpop.f32.mrb[5].mxu0  ;;  %v292_v61 = vadd.f32 %v3231_v62, %v3193_v15 }
 0x189   :  { %v3235_v2 = vpop.f32.mrb[6].mxu0 }
 0x18a   :  { %v3237_v3 = vpop.f32.mrb[7].mxu0 }
 0x190   :  { %v2657_v25 = vpop.eup %2656 }
 0x191   :  { %v391_v27 = vmul.f32 %v2657_v25, %v3196_v20 }
 0x193   :  { %v392_v28 = vadd.f32 %v391_v27, %v3199_v26  ;;  %v282_v27 = vadd.f32 %v2310_v60, %v3193_v15 }
 0x195   :  { %395 = vrot.lane.b32.xlu0 %v392_v28, %s2967_s8  ;;  %v393_v31 = vmul.f32 0.0, %v392_v28 }
 0x207   :  { %v396_v29 = vpop.permute.xlu0 %395 }
 0x208   :  { %v398_v30 = vmul.f32 %v396_v29, %v392_v28 }
 0x20a   :  { %400 = vrot.lane.b32.xlu0 %v398_v30, %s2967_s8 }
 0x27c   :  { %v401_v32 = vpop.permute.xlu0 %400 }
 0x27d   :  { %v403_v33 = vadd.f32 %v401_v32, %v393_v31 }
 0x27f   :  { %2658 = vtanh.f32 %v403_v33 }
 0x289   :  { %v2659_v34 = vpop.eup %2658 }
 0x28a   :  { %406 = vrot.lane.b32.xlu1 %v2659_v34, %s2967_s8 }
 0x2fc   :  { %v407_v35 = vpop.permute.xlu1 %406 }
 0x2fd   :  { %v409_v36 = vmul.f32 %v407_v35, %v392_v28 }
 0x2ff   :  { %411 = vrot.lane.b32.xlu1 %v409_v36, %s2968_s28 }
 0x371   :  { %v412_v37 = vpop.permute.xlu1 %411 }
 0x372   :  { %414 = vst.msk [vmem:[#allocation3] sm:$0xff] %vm314_vm3, %v412_v37  ;;  %2337 = vmatmul.mubr.msk.f32.vlgmr.msra.gmra.mrb[2].mxu1 %vm314_vm3, %v412_v37 }
 0x373   :  { %2548 = vmatpush3.bf16.msra.mxu1 %v3171_v8  ;;  %2358 = vmatprep.mubr.msk.f32.mxu1 %vm2964_vm0, %v2965_v1 }
 0x374   :  { %2549 = vmatprep.subr.bf16.mxu1 %v2963_v0 }
 0x377   :  { %2551 = vmatpush3.bf16.msra.mxu1 %v3175_v12 }
 0x378   :  { %2558 = vmatprep.subr.bf16.mxu1 %v2963_v0 }
 0x445   :  { %v484_v39 = vpop.f32.mrb[2].mxu1 }
 0x446   :  { %v488_v40 = vadd.f32 %v484_v39, %v272_v38  ;;  %v2338_v41 = vpop.f32.mrb[3].mxu1 }
 0x448   :  { %v489_v42 = vmul.f32 %v488_v40, %v3196_v20 }
 0x44a   :  { %2660 = vtanh.f32 %v489_v42 }
 0x454   :  { %v2661_v43 = vpop.eup %2660 }
 0x455   :  { %v491_v44 = vmul.f32 %v2661_v43, %v3196_v20 }
 0x457   :  { %v492_v45 = vadd.f32 %v491_v44, %v3199_v26  ;;  %v287_v44 = vadd.f32 %v3193_v15, %v3233_v63 }
 0x459   :  { %495 = vrot.lane.b32.xlu0 %v492_v45, %s2967_s8  ;;  %v493_v48 = vmul.f32 %v492_v45, %v403_v33 }
 0x4cb   :  { %v496_v46 = vpop.permute.xlu0 %495 }
 0x4cc   :  { %v498_v47 = vmul.f32 %v496_v46, %v492_v45 }
 0x4ce   :  { %500 = vrot.lane.b32.xlu1 %v498_v47, %s2967_s8 }
 0x540   :  { %v501_v49 = vpop.permute.xlu1 %500 }
 0x541   :  { %v503_v50 = vadd.f32 %v501_v49, %v493_v48 }
 0x543   :  { %2662 = vtanh.f32 %v503_v50 }
 0x54d   :  { %v2663_v57 = vpop.eup %2662 }
 0x54e   :  { %506 = vrot.lane.b32.xlu0 %v2663_v57, %s2967_s8 }
 0x5c0   :  { %v507_v58 = vpop.permute.xlu0 %506 }
 0x5c1   :  { %v509_v59 = vmul.f32 %v507_v58, %v492_v45 }
 0x5c3   :  { %511 = vrot.lane.b32.xlu1 %v509_v59, %s2968_s28 }
 0x635   :  { %v512_v4 = vpop.permute.xlu1 %511 }
 0x636   :  { %514 = vst.msk [vmem:[#allocation3 + $0x8] sm:$0xff] %vm314_vm3, %v512_v4  ;;  %2348 = vmatmul.mubr.msk.f32.vlgmr.msra.gmra.mrb[8].mxu0 %vm314_vm3, %v512_v4 }
 0x637   :  { %2554 = vmatpush3.bf16.msra.mxu0 %v3171_v8  ;;  %2369 = vmatprep.mubr.msk.f32.mxu0 %vm2964_vm0, %v2965_v1 }
 0x638   :  { %2555 = vmatprep.subr.bf16.mxu0 %v2963_v0 }
 0x63b   :  { %2557 = vmatpush3.bf16.msra.mxu0 %v3175_v12 }
 0x63c   :  { %2564 = vmatprep.subr.bf16.mxu0 %v2963_v0 }
 0x709   :  { %v584_v6 = vpop.f32.mrb[8].mxu0 }
 0x70a   :  { %v588_v7 = vadd.f32 %v584_v6, %v277_v5  ;;  %v2349_v9 = vpop.f32.mrb[9].mxu0 }
 0x70c   :  { %v589_v10 = vmul.f32 %v588_v7, %v3196_v20 }
 0x70e   :  { %2664 = vtanh.f32 %v589_v10 }
 0x718   :  { %v2665_v11 = vpop.eup %2664 }
 0x719   :  { %v591_v13 = vmul.f32 %v2665_v11, %v3196_v20 }
 0x71b   :  { %v592_v14 = vadd.f32 %v591_v13, %v3199_v26 }
 0x71d   :  { %595 = vrot.lane.b32.xlu0 %v592_v14, %s2967_s8  ;;  %v593_v18 = vmul.f32 %v592_v14, %v503_v50 }
 0x78f   :  { %v596_v16 = vpop.permute.xlu0 %595 }
 0x790   :  { %v598_v17 = vmul.f32 %v596_v16, %v592_v14  ;;  %v1116_v16 = vld [vmem:[#allocation12 + $0x8] sm:$0xff] }
 0x792   :  { %600 = vrot.lane.b32.xlu1 %v598_v17, %s2967_s8 }
 0x804   :  { %v601_v19 = vpop.permute.xlu1 %600 }
 0x805   :  { %v603_v21 = vadd.f32 %v601_v19, %v593_v18 }
 0x807   :  { %2666 = vtanh.f32 %v603_v21 }
 0x811   :  { %v2667_v22 = vpop.eup %2666 }
 0x812   :  { %606 = vrot.lane.b32.xlu0 %v2667_v22, %s2967_s8  ;;  %v1117_v22 = vld [vmem:[#allocation12 + $0x10] sm:$0xff] }
 0x884   :  { %v607_v23 = vpop.permute.xlu0 %606 }
 0x885   :  { %v609_v24 = vmul.f32 %v607_v23, %v592_v14  ;;  %v1115_v14 = vld [vmem:[#allocation12] sm:$0xff]  ;;  %v1118_v23 = vld [vmem:[#allocation12 + $0x18] sm:$0xff] }
 0x886   :  { %v2576_v17 = vpack.c.bf16 %v1116_v16, %v1115_v14 }
 0x887   :  { %611 = vrot.lane.b32.xlu1 %v609_v24, %s2968_s28  ;;  %v2580_v24 = vpack.c.bf16 %v1118_v23, %v1117_v22 }
 0x8f9   :  { %v612_v25 = vpop.permute.xlu1 %611 }
 0x8fa   :  { %614 = vst.msk [vmem:[#allocation3 + $0x10] sm:$0xff] %vm314_vm3, %v612_v25  ;;  %2359 = vmatmul.mubr.msk.f32.vlgmr.msra.gmra.mrb[4].mxu1 %vm314_vm3, %v612_v25 }
 0x8fb   :  { %2560 = vmatpush3.bf16.msra.mxu1 %v3171_v8  ;;  %2380 = vmatprep.mubr.msk.f32.mxu1 %vm2964_vm0, %v2965_v1 }
 0x8fc   :  { %2561 = vmatprep.subr.bf16.mxu1 %v2963_v0 }
 0x8ff   :  { %2563 = vmatpush3.bf16.msra.mxu1 %v3175_v12 }
 0x900   :  { %2570 = vmatprep.subr.bf16.mxu1 %v2963_v0 }
 0x9cd   :  { %v684_v28 = vpop.f32.mrb[4].mxu1 }
 0x9ce   :  { %v688_v29 = vadd.f32 %v684_v28, %v282_v27  ;;  %v2360_v30 = vpop.f32.mrb[5].mxu1  ;;  %v1124_v27 = vld [vmem:[#allocation3] sm:$0xff]  ;;  %v1125_v28 = vld [vmem:[#allocation3 + $0x8] sm:$0xff] }
 0x9d0   :  { %v689_v31 = vmul.f32 %v688_v29, %v3196_v20  ;;  %v1126_v29 = vld [vmem:[#allocation3 + $0x10] sm:$0xff] }
 0x9d2   :  { %2668 = vtanh.f32 %v689_v31 }
 0x9dc   :  { %v2669_v32 = vpop.eup %2668 }
 0x9dd   :  { %v691_v33 = vmul.f32 %v2669_v32, %v3196_v20 }
 0x9df   :  { %v692_v34 = vadd.f32 %v691_v33, %v3199_v26  ;;  %v297_v33 = vadd.f32 %v3193_v15, %v3237_v3 }
 0x9e1   :  { %695 = vrot.lane.b32.xlu0 %v692_v34, %s2967_s8  ;;  %v693_v37 = vmul.f32 %v692_v34, %v603_v21 }
 0xa53   :  { %v696_v35 = vpop.permute.xlu0 %695 }
 0xa54   :  { %v698_v36 = vmul.f32 %v696_v35, %v692_v34 }
 0xa56   :  { %700 = vrot.lane.b32.xlu1 %v698_v36, %s2967_s8 }
 0xac8   :  { %v701_v38 = vpop.permute.xlu1 %700 }
 0xac9   :  { %v703_v39 = vadd.f32 %v701_v38, %v693_v37 }
 0xacb   :  { %2670 = vtanh.f32 %v703_v39 }
 0xad5   :  { %v2671_v40 = vpop.eup %2670 }
 0xad6   :  { %706 = vrot.lane.b32.xlu0 %v2671_v40, %s2967_s8 }
 0xb48   :  { %v707_v41 = vpop.permute.xlu0 %706 }
 0xb49   :  { %v709_v42 = vmul.f32 %v707_v41, %v692_v34 }
 0xb4b   :  { %711 = vrot.lane.b32.xlu1 %v709_v42, %s2968_s28 }
 0xbbd   :  { %v712_v43 = vpop.permute.xlu1 %711 }
 0xbbe   :  { %714 = vst.msk [vmem:[#allocation3 + $0x18] sm:$0xff] %vm314_vm3, %v712_v43  ;;  %2370 = vmatmul.mubr.msk.f32.vlgmr.msra.gmra.mrb[10].mxu0 %vm314_vm3, %v712_v43 }
 0xbbf   :  { %2566 = vmatpush3.bf16.msra.mxu0 %v3171_v8  ;;  %2391 = vmatprep.mubr.msk.f32.mxu0 %vm2964_vm0, %v2965_v1 }
 0xbc0   :  { %2567 = vmatprep.subr.bf16.mxu0 %v2963_v0 }
 0xbc3   :  { %2569 = vmatpush3.bf16.msra.mxu0 %v3175_v12 }
 0xbc4   :  { %2577 = vmatprep.subr.bf16.mxu0 %v2576_v17 }
 0xbc5   :  { %v1127_v30 = vld [vmem:[#allocation3 + $0x18] sm:$0xff] }
 0xc91   :  { %v784_v45 = vpop.f32.mrb[10].mxu0 }
 0xc92   :  { %v788_v46 = vadd.f32 %v784_v45, %v287_v44  ;;  %v2371_v47 = vpop.f32.mrb[11].mxu0 }
 0xc94   :  { %v789_v48 = vmul.f32 %v788_v46, %v3196_v20 }
 0xc96   :  { %2672 = vtanh.f32 %v789_v48 }
 0xca0   :  { %v2673_v49 = vpop.eup %2672 }
 0xca1   :  { %v791_v50 = vmul.f32 %v2673_v49, %v3196_v20 }
 0xca3   :  { %v792_v51 = vadd.f32 %v791_v50, %v3199_v26 }
 0xca5   :  { %795 = vrot.lane.b32.xlu0 %v792_v51, %s2967_s8  ;;  %v793_v54 = vmul.f32 %v792_v51, %v703_v39 }
 0xd17   :  { %v796_v52 = vpop.permute.xlu0 %795 }
 0xd18   :  { %v798_v53 = vmul.f32 %v796_v52, %v792_v51  ;;  %v1119_v52 = vld [vmem:[#allocation13] sm:$0xff] }
 0xd1a   :  { %800 = vrot.lane.b32.xlu1 %v798_v53, %s2967_s8  ;;  %v1120_v53 = vld [vmem:[#allocation13 + $0x8] sm:$0xff] }
 0xd8c   :  { %v801_v55 = vpop.permute.xlu1 %800 }
 0xd8d   :  { %v803_v56 = vadd.f32 %v801_v55, %v793_v54  ;;  %v3334_v54 = vpack.c.bf16 %v1120_v53, %v1119_v52  ;;  %v1121_v55 = vld [vmem:[#allocation13 + $0x10] sm:$0xff] }
 0xd8f   :  { %2674 = vtanh.f32 %v803_v56 }
 0xd99   :  { %v2675_v57 = vpop.eup %2674 }
 0xd9a   :  { %806 = vrot.lane.b32.xlu0 %v2675_v57, %s2967_s8 }
 0xe0c   :  { %v807_v58 = vpop.permute.xlu0 %806 }
 0xe0d   :  { %v809_v59 = vmul.f32 %v807_v58, %v792_v51 }
 0xe0f   :  { %811 = vrot.lane.b32.xlu1 %v809_v59, %s2968_s28 }
 0xe81   :  { %v812_v60 = vpop.permute.xlu1 %811 }
 0xe82   :  { %814 = vst.msk [vmem:[#allocation3 + $0x20] sm:$0xff] %vm314_vm3, %v812_v60  ;;  %2381 = vmatmul.mubr.msk.f32.vlgmr.msra.gmra.mrb[6].mxu1 %vm314_vm3, %v812_v60 }
 0xe83   :  { %2572 = vmatpush3.bf16.msra.mxu1 %v3171_v8  ;;  %2402 = vmatprep.mubr.msk.f32.mxu1 %vm2964_vm0, %v2965_v1 }
 0xe84   :  { %2573 = vmatprep.subr.bf16.mxu1 %v2963_v0 }
 0xe87   :  { %2575 = vmatpush3.bf16.msra.mxu1 %v3175_v12 }
 0xe88   :  { %2584 = vmatprep.subr.bf16.mxu1 %v2963_v0 }
 0xe89   :  { %v1128_v31 = vld [vmem:[#allocation3 + $0x20] sm:$0xff] }
 0xf55   :  { %v884_v63 = vpop.f32.mrb[6].mxu1 }
 0xf56   :  { %v888_v4 = vadd.f32 %v884_v63, %v292_v61  ;;  %v2382_v5 = vpop.f32.mrb[7].mxu1  ;;  %v302_v63 = vadd.f32 %v3235_v2, %v3193_v15 }
 0xf58   :  { %v889_v6 = vmul.f32 %v888_v4, %v3196_v20 }
 0xf5a   :  { %2676 = vtanh.f32 %v889_v6 }
 0xf64   :  { %v2677_v7 = vpop.eup %2676 }
 0xf65   :  { %v891_v8 = vmul.f32 %v2677_v7, %v3196_v20  ;;  %v3361_v7 = vld [vmem:[#allocation15] ss:$0 sm:$0xff] }
 0xf67   :  { %v892_v9 = vadd.f32 %v891_v8, %v3199_v26 }
 0xf69   :  { %895 = vrot.lane.b32.xlu0 %v892_v9, %s2967_s8  ;;  %v893_v11 = vmul.f32 %v892_v9, %v803_v56  ;;  %v1122_v56 = vld [vmem:[#allocation13 + $0x18] sm:$0xff] }
 0xf6a   :  { %v3338_v57 = vpack.c.bf16 %v1122_v56, %v1121_v55 }
 0xfdb   :  { %v896_v10 = vpop.permute.xlu0 %895 }
 0xfdc   :  { %v898_v12 = vmul.f32 %v896_v10, %v892_v9 }
 0xfde   :  { %900 = vrot.lane.b32.xlu1 %v898_v12, %s2967_s8 }
0x1050   :  { %v901_v13 = vpop.permute.xlu1 %900 }
0x1051   :  { %v903_v62 = vadd.f32 %v901_v13, %v893_v11 }
0x1053   :  { %2678 = vtanh.f32 %v903_v62 }
0x105d   :  { %v2679_v18 = vpop.eup %2678 }
0x105e   :  { %906 = vrot.lane.b32.xlu0 %v2679_v18, %s2967_s8 }
0x10d0   :  { %v907_v19 = vpop.permute.xlu0 %906 }
0x10d1   :  { %v909_v21 = vmul.f32 %v907_v19, %v892_v9 }
0x10d3   :  { %911 = vrot.lane.b32.xlu1 %v909_v21, %s2968_s28 }
0x1145   :  { %v912_v25 = vpop.permute.xlu1 %911 }
0x1146   :  { %914 = vst.msk [vmem:[#allocation3 + $0x28] sm:$0xff] %vm314_vm3, %v912_v25  ;;  %2392 = vmatmul.mubr.msk.f32.vlgmr.msra.gmra.mrb[12].mxu0 %vm314_vm3, %v912_v25 }
0x1147   :  { %2579 = vmatpush3.bf16.msra.mxu0 %v2576_v17  ;;  %2413 = vmatprep.mubr.msk.f32.mxu0 %vm314_vm3, %v1124_v27 }
0x1148   :  { %2581 = vmatprep.subr.bf16.mxu0 %v2580_v24 }
0x114b   :  { %2583 = vmatpush3.bf16.msra.mxu0 %v2580_v24 }
0x114c   :  { %2596 = vmatprep.subr.bf16.mxu0 %v2963_v0 }
0x114d   :  { %v1129_v32 = vld [vmem:[#allocation3 + $0x28] sm:$0xff] }
0x114e   :  { %2414 = vmatmul.mubr.msk.f32.vlgmr.msra.gmra.mrb[14].mxu0 %vm314_vm3, %v1125_v28 }
0x114f   :  { %2416 = vmatprep.mubr.msk.f32.mxu0 %vm314_vm3, %v1126_v29  ;;  %2598 = vmatpush3.bf16.msra.mxu0 %v3334_v54 }
0x1150   :  { %2599 = vmatprep.subr.bf16.mxu0 %v2963_v0 }
0x1152   :  { %2417 = vmatmul.mubr.msk.f32.gmra.mrb[16].mxu0 %vm314_vm3, %v1127_v30 }
0x1153   :  { %2419 = vmatprep.mubr.msk.f32.mxu0 %vm314_vm3, %v1128_v31  ;;  %2601 = vmatpush3.bf16.msra.mxu0 %v3338_v57 }
0x1154   :  { %2608 = vmatprep.subr.bf16.mxu0 %v2963_v0 }
0x1156   :  { %2420 = vmatmul.mubr.msk.f32.gmra.mrb[18].mxu0 %vm314_vm3, %v1129_v32 }
0x1219   :  { %v984_v34 = vpop.f32.mrb[12].mxu0 }
0x121a   :  { %v988_v35 = vadd.f32 %v984_v34, %v297_v33  ;;  %v2393_v36 = vpop.f32.mrb[13].mxu0 }
0x121c   :  { %v989_v37 = vmul.f32 %v988_v35, %v3196_v20 }
0x121e   :  { %2680 = vtanh.f32 %v989_v37 }
0x1221   :  { %v3316_v38 = vpop.f32.mrb[14].mxu0 }
0x1222   :  { %v1228_v39 = vpop.f32.mrb[15].mxu0  ;;  %v1234_v37 = vadd.f32 %v3316_v38, %v3361_v7 }
0x1223   :  { %v1229_v8 = vadd.f32 %v3361_v7, %v1228_v39 }
0x1225   :  { %v3318_v40 = vpop.f32.mrb[16].mxu0 }
0x1226   :  { %v3320_v41 = vpop.f32.mrb[17].mxu0 }
0x1228   :  { %v2681_v42 = vpop.eup %2680 }
0x1229   :  { %v3322_v43 = vpop.f32.mrb[18].mxu0  ;;  %v991_v44 = vmul.f32 %v2681_v42, %v3196_v20 }
0x122a   :  { %v3325_v45 = vpop.f32.mrb[19].mxu0 }
0x122b   :  { %v992_v3 = vadd.f32 %v991_v44, %v3199_v26 }
0x122d   :  { %995 = vrot.lane.b32.xlu0 %v992_v3, %s2967_s8  ;;  %v993_v48 = vmul.f32 %v992_v3, %v903_v62 }
0x129f   :  { %v996_v46 = vpop.permute.xlu0 %995 }
0x12a0   :  { %v998_v47 = vmul.f32 %v996_v46, %v992_v3 }
0x12a2   :  { %1000 = vrot.lane.b32.xlu1 %v998_v47, %s2967_s8 }
0x1314   :  { %v1001_v49 = vpop.permute.xlu1 %1000 }
0x1315   :  { %v3330_v50 = vadd.f32 %v1001_v49, %v993_v48 }
0x1317   :  { %2682 = vtanh.f32 %v3330_v50 }
0x1321   :  { %v2683_v51 = vpop.eup %2682 }
0x1322   :  { %1006 = vrot.lane.b32.xlu0 %v2683_v51, %s2967_s8 }
0x1394   :  { %v1007_v58 = vpop.permute.xlu0 %1006 }
0x1395   :  { %v1009_v59 = vmul.f32 %v1007_v58, %v992_v3 }
0x1397   :  { %1011 = vrot.lane.b32.xlu1 %v1009_v59, %s2968_s28 }
0x1409   :  { %v1012_v60 = vpop.permute.xlu1 %1011 }
0x140a   :  { %1014 = vst.msk [vmem:[#allocation3 + $0x30] sm:$0xff] %vm314_vm3, %v1012_v60  ;;  %2403 = vmatmul.mubr.msk.f32.vlgmr.msra.gmra.mrb[8].mxu1 %vm314_vm3, %v1012_v60 }
0x140b   :  { %2586 = vmatpush3.bf16.msra.mxu1 %v3334_v54  ;;  %2433 = vmatprep.mubr.msk.f32.mxu1 %vm2964_vm0, %v2965_v1 }
0x140c   :  { %2587 = vmatprep.subr.bf16.mxu1 %v2963_v0 }
0x140f   :  { %2589 = vmatpush3.bf16.msra.mxu1 %v3338_v57 }
0x1410   :  { %2590 = vmatprep.subr.bf16.mxu1 %v2963_v0 }
0x1411   :  { %v1130_v61 = vld [vmem:[#allocation3 + $0x30] sm:$0xff] }
0x1412   :  { %2434 = vmatmul.mubr.f32.vlgmr.msra.gmra.mrb[10].mxu1 %v2965_v1  ;;  %2422 = vmatprep.mubr.msk.f32.mxu0 %vm314_vm3, %v1130_v61 }
0x1413   :  { %2592 = vmatpush3.bf16.msra.mxu1 %v3334_v54  ;;  %2444 = vmatprep.mubr.msk.f32.mxu1 %vm2964_vm0, %v2965_v1 }
0x1414   :  { %2593 = vmatprep.subr.bf16.mxu1 %v2963_v0 }
0x1417   :  { %2595 = vmatpush3.bf16.msra.mxu1 %v3338_v57 }
0x1418   :  { %2602 = vmatprep.subr.bf16.mxu1 %v2963_v0 }
0x14dd   :  { %v1084_v4 = vpop.f32.mrb[8].mxu1 }
0x14de   :  { %v1088_v5 = vadd.f32 %v1084_v4, %v302_v63  ;;  %v2404_v6 = vpop.f32.mrb[9].mxu1  ;;  %v1239_v4 = vadd.f32 %v3361_v7, %v3320_v41 }
0x14e0   :  { %v1089_v16 = vmul.f32 %v1088_v5, %v3196_v20 }
0x14e5   :  { %v1342_v9 = vpop.f32.mrb[10].mxu1 }
0x14e6   :  { %v1346_v10 = vadd.f32 %v1342_v9, %v1229_v8  ;;  %v2435_v12 = vpop.f32.mrb[11].mxu1 }
0x14e8   :  { %v1347_v11 = vmul.f32 %v1346_v10, %v3196_v20 }
0x14ea   :  { %2684 = vtanh.f32 %v1347_v11 }
0x14eb   :  { %2686 = vtanh.f32 %v1089_v16 }
0x14f4   :  { %v2685_v13 = vpop.eup %2684 }
0x14f5   :  { %v1349_v62 = vmul.f32 %v2685_v13, %v3196_v20  ;;  %v2687_v21 = vpop.eup %2686 }
0x14f6   :  { %v1091_v22 = vmul.f32 %v2687_v21, %v3196_v20 }
0x14f7   :  { %v1350_v14 = vadd.f32 %v1349_v62, %v3199_v26 }
0x14f8   :  { %v1092_v24 = vadd.f32 %v1091_v22, %v3199_v26 }
0x14f9   :  { %1353 = vrot.lane.b32.xlu0 %v1350_v14, %s2967_s8  ;;  %v1351_v17 = vmul.f32 0.0, %v1350_v14 }
0x14fa   :  { %v1093_v31 = vmul.f32 %v1092_v24, %v3330_v50 }
0x156b   :  { %v1354_v15 = vpop.permute.xlu0 %1353 }
0x156c   :  { %v1356_v2 = vmul.f32 %v1354_v15, %v1350_v14 }
0x156e   :  { %1358 = vrot.lane.b32.xlu1 %v1356_v2, %s2967_s8 }
0x15e0   :  { %v1359_v18 = vpop.permute.xlu1 %1358 }
0x15e1   :  { %v1361_v19 = vadd.f32 %v1359_v18, %v1351_v17 }
0x15e3   :  { %2688 = vtanh.f32 %v1361_v19 }
0x15ed   :  { %v2689_v23 = vpop.eup %2688 }
0x15ee   :  { %1364 = vrot.lane.b32.xlu0 %v2689_v23, %s2967_s8 }
0x15f2   :  { %1095 = vrot.lane.b32.xlu0 %v1092_v24, %s2967_s8 }
0x1660   :  { %v1365_v25 = vpop.permute.xlu0 %1364 }
0x1661   :  { %v1367_v27 = vmul.f32 %v1365_v25, %v1350_v14 }
0x1663   :  { %1370 = vrot.lane.b32.xlu1 %v1367_v27, %s2968_s28 }
0x1664   :  { %v1096_v28 = vpop.permute.xlu0 %1095 }
0x1665   :  { %v1098_v29 = vmul.f32 %v1096_v28, %v1092_v24 }
0x1667   :  { %1100 = vrot.lane.b32.xlu0 %v1098_v29, %s2967_s8 }
0x16d5   :  { %v1371_v30 = vpop.permute.xlu1 %1370 }
0x16d6   :  { %2445 = vmatmul.mubr.msk.f32.vlgmr.msra.gmra.mrb[12].mxu1 %vm314_vm3, %v1371_v30 }
0x16d7   :  { %2604 = vmatpush3.bf16.msra.mxu1 %v3334_v54  ;;  %2466 = vmatprep.mubr.msk.f32.mxu1 %vm2964_vm0, %v2965_v1 }
0x16d8   :  { %2605 = vmatprep.subr.bf16.mxu1 %v2963_v0 }
0x16d9   :  { %v1101_v32 = vpop.permute.xlu0 %1100 }
0x16da   :  { %v1103_v33 = vadd.f32 %v1101_v32, %v1093_v31 }
0x16db   :  { %2607 = vmatpush3.bf16.msra.mxu1 %v3338_v57 }
0x16dc   :  { %2690 = vtanh.f32 %v1103_v33  ;;  %2614 = vmatprep.subr.bf16.mxu1 %v2963_v0 }
0x16e6   :  { %v2691_v34 = vpop.eup %2690 }
0x16e7   :  { %1106 = vrot.lane.b32.xlu0 %v2691_v34, %s2967_s8 }
0x1759   :  { %v1107_v35 = vpop.permute.xlu0 %1106 }
0x175a   :  { %v1109_v36 = vmul.f32 %v1107_v35, %v1092_v24 }
0x175c   :  { %1111 = vrot.lane.b32.xlu0 %v1109_v36, %s2968_s28 }
0x17a9   :  { %v1440_v39 = vpop.f32.mrb[12].mxu1 }
0x17aa   :  { %v1444_v42 = vadd.f32 %v1440_v39, %v1234_v37  ;;  %v2446_v44 = vpop.f32.mrb[13].mxu1  ;;  %v1249_v37 = vadd.f32 %v3361_v7, %v3325_v45 }
0x17ac   :  { %v1445_v3 = vmul.f32 %v1444_v42, %v3196_v20 }
0x17ae   :  { %2692 = vtanh.f32 %v1445_v3 }
0x17b8   :  { %v2693_v46 = vpop.eup %2692 }
0x17b9   :  { %v1447_v47 = vmul.f32 %v2693_v46, %v3196_v20 }
0x17bb   :  { %v1448_v48 = vadd.f32 %v1447_v47, %v3199_v26 }
0x17bd   :  { %1451 = vrot.lane.b32.xlu1 %v1448_v48, %s2967_s8  ;;  %v1449_v52 = vmul.f32 %v1448_v48, %v1361_v19  ;;  %v1244_v19 = vadd.f32 %v3318_v40, %v3361_v7 }
0x17ce   :  { %v1112_v49 = vpop.permute.xlu0 %1111 }
0x17cf   :  { %1114 = vst.msk [vmem:[#allocation3 + $0x38] sm:$0xff] %vm314_vm3, %v1112_v49 }
0x17d6   :  { %v1131_v50 = vld [vmem:[#allocation3 + $0x38] sm:$0xff] }
0x17d7   :  { %2423 = vmatmul.mubr.msk.f32.gmra.mrb[20].mxu0 %vm314_vm3, %v1131_v50 }
0x17d8   :  { %2455 = vmatprep.mubr.msk.f32.mxu0 %vm2964_vm0, %v2965_v1 }
0x182f   :  { %v1452_v38 = vpop.permute.xlu1 %1451 }
0x1830   :  { %v1454_v51 = vmul.f32 %v1452_v38, %v1448_v48 }
0x1832   :  { %1456 = vrot.lane.b32.xlu1 %v1454_v51, %s2967_s8 }
0x18a4   :  { %v1457_v53 = vpop.permute.xlu1 %1456 }
0x18a5   :  { %v1459_v55 = vadd.f32 %v1457_v53, %v1449_v52 }
0x18a7   :  { %2694 = vtanh.f32 %v1459_v55 }
0x18aa   :  { %v3397_v56 = vpop.f32.mrb[20].mxu0 }
0x18ab   :  { %v3399_v58 = vpop.f32.mrb[21].mxu0 }
0x18b1   :  { %v2695_v59 = vpop.eup %2694 }
0x18b2   :  { %1462 = vrot.lane.b32.xlu1 %v2695_v59, %s2967_s8 }
0x1924   :  { %v1463_v60 = vpop.permute.xlu1 %1462 }
0x1925   :  { %v1465_v61 = vmul.f32 %v1463_v60, %v1448_v48  ;;  %v1254_v60 = vadd.f32 %v3322_v43, %v3361_v7 }
0x1927   :  { %1468 = vrot.lane.b32.xlu1 %v1465_v61, %s2968_s28 }
0x1999   :  { %v1469_v63 = vpop.permute.xlu1 %1468 }
0x199a   :  { %2456 = vmatmul.mubr.msk.f32.vlgmr.msra.gmra.mrb[22].mxu0 %vm314_vm3, %v1469_v63 }
0x199b   :  { %2610 = vmatpush3.bf16.msra.mxu0 %v3334_v54  ;;  %2477 = vmatprep.mubr.msk.f32.mxu0 %vm2964_vm0, %v2965_v1 }
0x199c   :  { %2611 = vmatprep.subr.bf16.mxu0 %v2963_v0 }
0x199f   :  { %2613 = vmatpush3.bf16.msra.mxu0 %v3338_v57 }
0x19a0   :  { %2620 = vmatprep.subr.bf16.mxu0 %v2963_v0 }
0x1a6d   :  { %v1538_v5 = vpop.f32.mrb[22].mxu0 }
0x1a6e   :  { %v1542_v6 = vadd.f32 %v1538_v5, %v1239_v4  ;;  %v2457_v8 = vpop.f32.mrb[23].mxu0 }
0x1a70   :  { %v1543_v9 = vmul.f32 %v1542_v6, %v3196_v20 }
0x1a72   :  { %2696 = vtanh.f32 %v1543_v9 }
0x1a7c   :  { %v2697_v10 = vpop.eup %2696 }
0x1a7d   :  { %v1545_v12 = vmul.f32 %v2697_v10, %v3196_v20 }
0x1a7f   :  { %v1546_v11 = vadd.f32 %v1545_v12, %v3199_v26 }
0x1a81   :  { %1549 = vrot.lane.b32.xlu0 %v1546_v11, %s2967_s8  ;;  %v1547_v14 = vmul.f32 %v1546_v11, %v1459_v55 }
0x1af3   :  { %v1550_v13 = vpop.permute.xlu0 %1549 }
0x1af4   :  { %v1552_v62 = vmul.f32 %v1550_v13, %v1546_v11 }
0x1af6   :  { %1554 = vrot.lane.b32.xlu1 %v1552_v62, %s2967_s8 }
0x1b68   :  { %v1555_v15 = vpop.permute.xlu1 %1554 }
0x1b69   :  { %v1557_v41 = vadd.f32 %v1555_v15, %v1547_v14  ;;  %v1259_v15 = vadd.f32 %v3361_v7, %v3399_v58 }
0x1b6b   :  { %2698 = vtanh.f32 %v1557_v41 }
0x1b75   :  { %v2699_v2 = vpop.eup %2698 }
0x1b76   :  { %1560 = vrot.lane.b32.xlu0 %v2699_v2, %s2967_s8 }
0x1be8   :  { %v1561_v16 = vpop.permute.xlu0 %1560 }
0x1be9   :  { %v1563_v17 = vmul.f32 %v1561_v16, %v1546_v11 }
0x1beb   :  { %1566 = vrot.lane.b32.xlu1 %v1563_v17, %s2968_s28 }
0x1c5d   :  { %v1567_v18 = vpop.permute.xlu1 %1566 }
0x1c5e   :  { %2467 = vmatmul.mubr.msk.f32.vlgmr.msra.gmra.mrb[14].mxu1 %vm314_vm3, %v1567_v18 }
0x1c5f   :  { %2616 = vmatpush3.bf16.msra.mxu1 %v3334_v54  ;;  %2488 = vmatprep.mubr.msk.f32.mxu1 %vm2964_vm0, %v2965_v1 }
0x1c60   :  { %2617 = vmatprep.subr.bf16.mxu1 %v2963_v0 }
0x1c63   :  { %2619 = vmatpush3.bf16.msra.mxu1 %v3338_v57 }
0x1c64   :  { %2626 = vmatprep.subr.bf16.mxu1 %v2963_v0 }
0x1d31   :  { %v1636_v21 = vpop.f32.mrb[14].mxu1 }
0x1d32   :  { %v1640_v22 = vadd.f32 %v1636_v21, %v1244_v19  ;;  %v2468_v23 = vpop.f32.mrb[15].mxu1 }
0x1d34   :  { %v1641_v24 = vmul.f32 %v1640_v22, %v3196_v20 }
0x1d36   :  { %2700 = vtanh.f32 %v1641_v24 }
0x1d40   :  { %v2701_v25 = vpop.eup %2700 }
0x1d41   :  { %v1643_v27 = vmul.f32 %v2701_v25, %v3196_v20 }
0x1d43   :  { %v1644_v28 = vadd.f32 %v1643_v27, %v3199_v26 }
0x1d45   :  { %1647 = vrot.lane.b32.xlu0 %v1644_v28, %s2967_s8  ;;  %v1645_v31 = vmul.f32 %v1644_v28, %v1557_v41 }
0x1db7   :  { %v1648_v29 = vpop.permute.xlu0 %1647 }
0x1db8   :  { %v1650_v30 = vmul.f32 %v1648_v29, %v1644_v28 }
0x1dba   :  { %1652 = vrot.lane.b32.xlu1 %v1650_v30, %s2967_s8  ;;  %v1264_v30 = vadd.f32 %v3397_v56, %v3361_v7  ;;  %v2054_v56 = vld [vmem:[#allocation16] sm:$0xff] }
0x1e2c   :  { %v1653_v32 = vpop.permute.xlu1 %1652 }
0x1e2d   :  { %v1655_v40 = vadd.f32 %v1653_v32, %v1645_v31 }
0x1e2f   :  { %2702 = vtanh.f32 %v1655_v40 }
0x1e39   :  { %v2703_v33 = vpop.eup %2702 }
0x1e3a   :  { %1658 = vrot.lane.b32.xlu0 %v2703_v33, %s2967_s8 }
0x1eac   :  { %v1659_v34 = vpop.permute.xlu0 %1658 }
0x1ead   :  { %v1661_v35 = vmul.f32 %v1659_v34, %v1644_v28 }
0x1eaf   :  { %1664 = vrot.lane.b32.xlu1 %v1661_v35, %s2968_s28 }
0x1f21   :  { %v1665_v36 = vpop.permute.xlu1 %1664 }
0x1f22   :  { %2478 = vmatmul.mubr.msk.f32.vlgmr.msra.gmra.mrb[24].mxu0 %vm314_vm3, %v1665_v36 }
0x1f23   :  { %2622 = vmatpush3.bf16.msra.mxu0 %v3334_v54  ;;  %2499 = vmatprep.mubr.msk.f32.mxu0 %vm2964_vm0, %v2965_v1 }
0x1f24   :  { %2623 = vmatprep.subr.bf16.mxu0 %v2963_v0 }
0x1f27   :  { %2625 = vmatpush3.bf16.msra.mxu0 %v3338_v57 }
0x1f28   :  { %2632 = vmatprep.subr.bf16.mxu0 %v2963_v0 }
0x1ff5   :  { %v1734_v39 = vpop.f32.mrb[24].mxu0 }
0x1ff6   :  { %v1738_v42 = vadd.f32 %v1734_v39, %v1249_v37  ;;  %v2479_v44 = vpop.f32.mrb[25].mxu0 }
0x1ff8   :  { %v1739_v3 = vmul.f32 %v1738_v42, %v3196_v20 }
0x1ffa   :  { %2704 = vtanh.f32 %v1739_v3  ;;  %v2055_v3 = vld [vmem:[#allocation16 + $0x8] sm:$0xff] }
0x2004   :  { %v2705_v46 = vpop.eup %2704 }
0x2005   :  { %v1741_v47 = vmul.f32 %v2705_v46, %v3196_v20  ;;  %v2056_v46 = vld [vmem:[#allocation16 + $0x10] sm:$0xff] }
0x2007   :  { %v1742_v48 = vadd.f32 %v1741_v47, %v3199_v26  ;;  %v2633_v47 = vpack.c.bf16 %v2055_v3, %v2054_v56 }
0x2009   :  { %1745 = vrot.lane.b32.xlu0 %v1742_v48, %s2967_s8  ;;  %v1743_v38 = vmul.f32 %v1742_v48, %v1655_v40 }
0x207b   :  { %v1746_v49 = vpop.permute.xlu0 %1745 }
0x207c   :  { %v1748_v50 = vmul.f32 %v1746_v49, %v1742_v48 }
0x207e   :  { %1750 = vrot.lane.b32.xlu1 %v1748_v50, %s2967_s8 }
0x20f0   :  { %v1751_v51 = vpop.permute.xlu1 %1750 }
0x20f1   :  { %v1753_v45 = vadd.f32 %v1751_v51, %v1743_v38  ;;  %v2192_v51 = vld [vmem:[#allocation18] ss:$0 sm:$0xff] }
0x20f3   :  { %2706 = vtanh.f32 %v1753_v45 }
0x20fd   :  { %v2707_v52 = vpop.eup %2706 }
0x20fe   :  { %1756 = vrot.lane.b32.xlu0 %v2707_v52, %s2967_s8 }
0x2170   :  { %v1757_v53 = vpop.permute.xlu0 %1756 }
0x2171   :  { %v1759_v55 = vmul.f32 %v1757_v53, %v1742_v48  ;;  %v2057_v48 = vld [vmem:[#allocation16 + $0x18] sm:$0xff] }
0x2172   :  { %v2636_v49 = vpack.c.bf16 %v2057_v48, %v2056_v46 }
0x2173   :  { %1762 = vrot.lane.b32.xlu1 %v1759_v55, %s2968_s28 }
0x21e5   :  { %v1763_v59 = vpop.permute.xlu1 %1762 }
0x21e6   :  { %2489 = vmatmul.mubr.msk.f32.vlgmr.msra.gmra.mrb[16].mxu1 %vm314_vm3, %v1763_v59 }
0x21e7   :  { %2628 = vmatpush3.bf16.msra.mxu1 %v3334_v54  ;;  %2510 = vmatprep.mubr.msk.f32.mxu1 %vm2964_vm0, %v2965_v1 }
0x21e8   :  { %2629 = vmatprep.subr.bf16.mxu1 %v2963_v0 }
0x21eb   :  { %2631 = vmatpush3.bf16.msra.mxu1 %v3338_v57 }
0x22b9   :  { %v1832_v61 = vpop.f32.mrb[16].mxu1 }
0x22ba   :  { %v1836_v63 = vadd.f32 %v1832_v61, %v1254_v60  ;;  %v2490_v4 = vpop.f32.mrb[17].mxu1 }
0x22bc   :  { %v1837_v5 = vmul.f32 %v1836_v63, %v3196_v20 }
0x22be   :  { %2708 = vtanh.f32 %v1837_v5 }
0x22c8   :  { %v2709_v6 = vpop.eup %2708 }
0x22c9   :  { %v1839_v8 = vmul.f32 %v2709_v6, %v3196_v20 }
0x22cb   :  { %v1840_v54 = vadd.f32 %v1839_v8, %v3199_v26 }
0x22cd   :  { %1843 = vrot.lane.b32.xlu0 %v1840_v54, %s2967_s8  ;;  %v1841_v57 = vmul.f32 %v1840_v54, %v1753_v45 }
0x233f   :  { %v1844_v9 = vpop.permute.xlu0 %1843 }
0x2340   :  { %v1846_v10 = vmul.f32 %v1844_v9, %v1840_v54 }
0x2342   :  { %1848 = vrot.lane.b32.xlu1 %v1846_v10, %s2967_s8 }
0x23b4   :  { %v1849_v12 = vpop.permute.xlu1 %1848 }
0x23b5   :  { %v1851_v43 = vadd.f32 %v1849_v12, %v1841_v57 }
0x23b7   :  { %2710 = vtanh.f32 %v1851_v43 }
0x23c1   :  { %v2711_v11 = vpop.eup %2710 }
0x23c2   :  { %1854 = vrot.lane.b32.xlu0 %v2711_v11, %s2967_s8 }
0x2434   :  { %v1855_v13 = vpop.permute.xlu0 %1854 }
0x2435   :  { %v1857_v62 = vmul.f32 %v1855_v13, %v1840_v54 }
0x2437   :  { %1860 = vrot.lane.b32.xlu1 %v1857_v62, %s2968_s28 }
0x24a9   :  { %v1861_v14 = vpop.permute.xlu1 %1860 }
0x24aa   :  { %2500 = vmatmul.mubr.msk.f32.vlgmr.msra.gmra.mrb[26].mxu0 %vm314_vm3, %v1861_v14 }
0x24ab   :  { %2521 = vmatprep.mubr.msk.f32.mxu0 %vm2964_vm0, %v2965_v1  ;;  %2634 = vmatpush3.bf16.msra.mxu0 %v2633_v47 }
0x24ac   :  { %2635 = vmatprep.subr.bf16.mxu0 %v2963_v0 }
0x24af   :  { %2637 = vmatpush3.bf16.msra.mxu0 %v2636_v49 }
0x257d   :  { %v1930_v41 = vpop.f32.mrb[26].mxu0 }
0x257e   :  { %v1934_v2 = vadd.f32 %v1930_v41, %v1259_v15  ;;  %v2501_v16 = vpop.f32.mrb[27].mxu0 }
0x2580   :  { %v1935_v17 = vmul.f32 %v1934_v2, %v3196_v20 }
0x2582   :  { %2712 = vtanh.f32 %v1935_v17 }
0x258c   :  { %v2713_v18 = vpop.eup %2712 }
0x258d   :  { %v1937_v19 = vmul.f32 %v2713_v18, %v3196_v20 }
0x258f   :  { %v1938_v21 = vadd.f32 %v1937_v19, %v3199_v26 }
0x2591   :  { %1941 = vrot.lane.b32.xlu0 %v1938_v21, %s2967_s8  ;;  %v1939_v1 = vmul.f32 %v1938_v21, %v1851_v43 }
0x2603   :  { %v1942_v22 = vpop.permute.xlu0 %1941 }
0x2604   :  { %v1944_v23 = vmul.f32 %v1942_v22, %v1938_v21 }
0x2606   :  { %1946 = vrot.lane.b32.xlu1 %v1944_v23, %s2967_s8 }
0x2678   :  { %v1947_v24 = vpop.permute.xlu1 %1946 }
0x2679   :  { %v1949_v58 = vadd.f32 %v1947_v24, %v1939_v1 }
0x267b   :  { %2714 = vtanh.f32 %v1949_v58 }
0x2685   :  { %v2715_v25 = vpop.eup %2714 }
0x2686   :  { %1952 = vrot.lane.b32.xlu0 %v2715_v25, %s2967_s8 }
0x26f8   :  { %v1953_v27 = vpop.permute.xlu0 %1952 }
0x26f9   :  { %v1955_v28 = vmul.f32 %v1953_v27, %v1938_v21 }
0x26fb   :  { %1958 = vrot.lane.b32.xlu1 %v1955_v28, %s2968_s28 }
0x276d   :  { %v1959_v29 = vpop.permute.xlu1 %1958 }
0x276e   :  { %2511 = vmatmul.mubr.msk.f32.vlgmr.msra.gmra.mrb[18].mxu1 %vm314_vm3, %v1959_v29 }
0x2841   :  { %v2028_v31 = vpop.f32.mrb[18].mxu1 }
0x2842   :  { %v2032_v32 = vadd.f32 %v2028_v31, %v1264_v30  ;;  %v2512_v40 = vpop.f32.mrb[19].mxu1 }
0x2844   :  { %v2033_v33 = vmul.f32 %v2032_v32, %v3196_v20 }
0x2846   :  { %2716 = vtanh.f32 %v2033_v33 }
0x2850   :  { %v2717_v34 = vpop.eup %2716 }
0x2851   :  { %v2035_v35 = vmul.f32 %v2717_v34, %v3196_v20 }
0x2853   :  { %v2036_v36 = vadd.f32 %v2035_v35, %v3199_v26 }
0x2855   :  { %2039 = vrot.lane.b32.xlu0 %v2036_v36, %s2967_s8  ;;  %v2037_v42 = vmul.f32 %v2036_v36, %v1949_v58 }
0x28c7   :  { %v2040_v37 = vpop.permute.xlu0 %2039 }
0x28c8   :  { %v2042_v39 = vmul.f32 %v2040_v37, %v2036_v36 }
0x28ca   :  { %2044 = vrot.lane.b32.xlu1 %v2042_v39, %s2967_s8 }
0x293c   :  { %v2045_v44 = vpop.permute.xlu1 %2044 }
0x293d   :  { %v2047_v7 = vadd.f32 %v2045_v44, %v2037_v42 }
0x293f   :  { %2718 = vtanh.f32 %v2047_v7 }
0x2949   :  { %v2719_v20 = vpop.eup %2718 }
0x294a   :  { %2050 = vrot.lane.b32.xlu0 %v2719_v20, %s2967_s8 }
0x29bc   :  { %v2051_v26 = vpop.permute.xlu0 %2050 }
0x29bd   :  { %v2053_v50 = vmul.f32 %v2051_v26, %v2036_v36 }
0x29bf   :  { %2066 = vrot.lane.b32.xlu1 %v2053_v50, %s2968_s28 }
0x2a31   :  { %v2067_v38 = vpop.permute.xlu1 %2066 }
0x2a32   :  { %2522 = vmatmul.mubr.msk.f32.vlgmr.msra.gmra.mrb[28].mxu0 %vm314_vm3, %v2067_v38 }
0x2b05   :  { %v2136_v45 = vpop.f32.mrb[28].mxu0 }
0x2b06   :  { %v2137_v52 = vadd.f32 %v2192_v51, %v2136_v45  ;;  %v2523_v53 = vpop.f32.mrb[29].mxu0 }
0x2b08   :  { %2140 = vst [vmem:[#allocation19] sm:$0xff] %v2137_v52 }
0x2b09   :  { %2929 = shalt.err (!%p2926_p6)
}
0x2b0a   :  { %s2930_s30 = scalar_lea.hbm %s3511_s9, 128 }
0x2b0b   :  { %p2931_p7 = scmp.ne.s32.totalorder %s3511_s9, %s2930_s30  ;;  %p2934_p8 = scmp.lt.u32.totalorder %s2930_s30, %s3511_s9 }
0x2b0d   :  { %p2936_p9 = pnand %p2934_p8, %p2931_p7 }
0x2b0f   :  { %2939 = shalt.err (!%p2936_p9)
}
0x2b10   :  { %2150 = dma.vmem_to_hbm [thread:$0]  %s2148_s2, 128, %s3511_s9, [#allocation6]  }
0x2b11   :  { %2950 = dma.done.wait [#allocation6], 128  }
0x2b12   :  { %2951 = vsyncadd [#allocation6], 4294967168 }
0x2b13   :  { %2154 = vsyncpa [#allocation5], 1 }
0x2b14   :  { %2155 = vsyncpa [#allocation8], 1 }
0x2b15   :  { %2156 = vsyncpa [#allocation11], 1 }
0x2b16   :  { %2157 = vsyncpa [#allocation14], 1 }
0x2b17   :  { %2158 = vsyncpa [#allocation17], 1 }
0x2b18   :  { %2159 = vsyncpa [#allocation6], 1 }

</bundles_post_ra>
